<compile_context>
chip_gen: v7x
topology: tpu7x:2x2x1
jax: 0.10.0
libtpu: 0.0.40
codegen_flags: <defaults>
</compile_context>

<pallas_src>
import functools

import jax
import jax.numpy as jnp
import numpy as np
from jax.experimental import pallas as pl
from jax.experimental.pallas import tpu as pltpu


# Set to jnp.bfloat16 on v6e/v7x for ~2x MXU throughput (accumulation stays f32).
COMPUTE_DTYPE = jnp.float32


def sttn_kernel(x_ref, adj_ref, w_in_ref, b_in_ref, wt_ref, bt_ref,
                ws_ref, bs_ref, w_out_ref, b_out_ref, out_ref,
                *, T, num_blocks, Kt, compute_dtype):
    """One batch element per grid step. x_ref: [1, T*N, F] (rows ordered (t, n))."""
    N = adj_ref.shape[0]
    H = w_in_ref.shape[1]
    TN = T * N
    pad = (Kt - 1) // 2

    def mm(a, b):
        # dense 2-D MXU matmul with f32 accumulation
        return jnp.dot(a.astype(compute_dtype), b.astype(compute_dtype),
                       preferred_element_type=jnp.float32)

    x2 = x_ref[0]                                   # [T*N, F]
    adj = adj_ref[...]                              # [N, N] -- single resident copy

    # input_proj: 1x1 conv == one [T*N, F] @ [F, H] matmul
    h2 = mm(x2, w_in_ref[...]) + b_in_ref[...]      # [T*N, H], f32

    # NOTE: static unroll is fine for small num_blocks; switch to lax.fori_loop
    # with pl.ds-indexed weights if num_blocks grows beyond ~4.
    for blk in range(num_blocks):
        res2 = h2

        # --- temporal conv (Kt, 1), 'same' padding: pad T once, static windows ---
        h3 = h2.reshape(T, N, H)
        if pad > 0:
            zpad = jnp.zeros((pad, N, H), jnp.float32)
            hp = jnp.concatenate([zpad, h3, zpad], axis=0)       # [T + 2*pad, N, H]
        else:
            hp = h3
        acc = mm(hp[0:T].reshape(TN, H), wt_ref[blk, 0])
        for k in range(1, Kt):
            acc = acc + mm(hp[k:k + T].reshape(TN, H), wt_ref[blk, k])
        tc2 = jnp.maximum(acc + bt_ref[blk], 0.0)                # bias added once

        # --- spatial graph conv: adj applied over the node dim (no broadcast) ---
        tc3 = tc2.reshape(T, N, H)
        sp2 = jnp.concatenate([mm(adj, tc3[t]) for t in range(T)], axis=0)  # [T*N, H]
        sp2 = mm(sp2, ws_ref[blk]) + bs_ref[blk]                 # channel linear
        h2 = jnp.maximum(sp2 + res2, 0.0)                        # residual + ReLU

    # output_layer only on the last timestep (torch then slices x[:, :, -1, :])
    h_last = h2.reshape(T, N, H)[T - 1]                          # [N, H]
    out = mm(h_last, w_out_ref[...]) + b_out_ref[...]            # [N, CP_padded]
    out_ref[0] = out.astype(out_ref.dtype)


def sttn_forward(x, adj, params, *, num_blocks, Kt, predict_len, out_channels,
                 compute_dtype=COMPUTE_DTYPE):
    """x: [B, T, N, F] -> [B, predict_len, N, out_channels] (matches torch STTN)."""
    B, T, N, F = x.shape
    H = params["w_in"].shape[1]
    CP = out_channels * predict_len
    CPp = ((CP + 127) // 128) * 128        # lane-dense output width (multiple of 128)

    # Pad the output projection so the kernel's output minor dim is lane-dense
    # (unmasked vector stores); padded columns are exact zeros and sliced off below.
    w_out = jnp.pad(params["w_out"], ((0, 0), (0, CPp - CP)))
    b_out = jnp.pad(params["b_out"], ((0, 0), (0, CPp - CP)))

    xt = x.reshape(B, T * N, F)            # flat (t, n)-major rows, channels minor
    TN = T * N

    kern = functools.partial(sttn_kernel, T=T, num_blocks=num_blocks, Kt=Kt,
                             compute_dtype=compute_dtype)

    grid_spec = pltpu.PrefetchScalarGridSpec(
        num_scalar_prefetch=0,
        grid=(B,),
        in_specs=[
            pl.BlockSpec((1, TN, F), lambda b: (b, 0, 0)),                 # x tile
            pl.BlockSpec((N, N), lambda b: (0, 0)),                        # adj (resident)
            pl.BlockSpec((F, H), lambda b: (0, 0)),                        # w_in
            pl.BlockSpec((1, H), lambda b: (0, 0)),                        # b_in
            pl.BlockSpec((num_blocks, Kt, H, H), lambda b: (0, 0, 0, 0)),  # wt
            pl.BlockSpec((num_blocks, 1, H), lambda b: (0, 0, 0)),         # bt
            pl.BlockSpec((num_blocks, H, H), lambda b: (0, 0, 0)),         # ws
            pl.BlockSpec((num_blocks, 1, H), lambda b: (0, 0, 0)),         # bs
            pl.BlockSpec((H, CPp), lambda b: (0, 0)),                      # w_out (padded)
            pl.BlockSpec((1, CPp), lambda b: (0, 0)),                      # b_out (padded)
        ],
        out_specs=pl.BlockSpec((1, N, CPp), lambda b: (b, 0, 0)),
    )

    # advisory cost estimate for XLA scheduling around the fused call
    flops = B * (2 * TN * F * H
                 + num_blocks * (Kt * 2 * TN * H * H + T * 2 * N * N * H
                                 + 2 * TN * H * H)
                 + 2 * N * H * CPp)
    bytes_accessed = 4 * (B * TN * F + N * N + F * H + H
                          + num_blocks * (Kt * H * H + H * H + 2 * H)
                          + H * CPp + CPp + B * N * CPp)

    out = pl.pallas_call(
        kern,
        out_shape=jax.ShapeDtypeStruct((B, N, CPp), jnp.float32),
        grid_spec=grid_spec,
        compiler_params=pltpu.CompilerParams(
            dimension_semantics=("parallel",),
            # v7x has 64 MiB VMEM; the per-batch working set here (a handful of
            # [T*N, H] f32 temporaries, double-buffered) is well under this budget.
            vmem_limit_bytes=48 * 1024 * 1024),
        cost_estimate=pl.CostEstimate(flops=flops, transcendentals=0,
                                      bytes_accessed=bytes_accessed),
    )(xt, adj, params["w_in"], params["b_in"], params["wt"], params["bt"],
      params["ws"], params["bs"], w_out, b_out)

    # glue mirroring torch: x[:, :, -1, :] -> [B, CP, N] -> reshape
    o = out[:, :, :CP]                       # drop lane padding -> [B, N, CP]
    o = jnp.transpose(o, (0, 2, 1))          # [B, CP, N]
    return o.reshape(B, predict_len, N, out_channels)


def sttn_ref(x, adj, params, *, num_blocks, Kt, predict_len, out_channels):
    """Pure-JAX reference (same math) for correctness checking."""
    B, T, N, F = x.shape
    pad = (Kt - 1) // 2
    h = jnp.einsum('btnf,fh->btnh', x, params["w_in"]) + params["b_in"][0]
    for blk in range(num_blocks):
        res = h
        hp = jnp.pad(h, ((0, 0), (pad, pad), (0, 0), (0, 0)))
        acc = jnp.zeros_like(h)
        for k in range(Kt):
            acc = acc + jnp.einsum('btnc,cd->btnd', hp[:, k:k + T],
                                   params["wt"][blk, k])
        tc = jax.nn.relu(acc + params["bt"][blk, 0])
        sp = jnp.einsum('nm,btmc->btnc', adj, tc)
        sp = jnp.einsum('btnc,cd->btnd', sp, params["ws"][blk]) + params["bs"][blk, 0]
        h = jax.nn.relu(sp + res)
    o = jnp.einsum('btnc,cd->btnd', h, params["w_out"]) + params["b_out"][0]
    o = jnp.transpose(o[:, -1], (0, 2, 1))    # [B, CP, N]
    return o.reshape(B, predict_len, N, out_channels)


def init_params(key, in_channels, out_channels, hidden, num_blocks, Kt, predict_len):
    ks = jax.random.split(key, 8)
    s = 0.1
    cp = out_channels * predict_len
    return dict(
        w_in=s * jax.random.normal(ks[0], (in_channels, hidden), jnp.float32),
        b_in=s * jax.random.normal(ks[1], (1, hidden), jnp.float32),
        wt=s * jax.random.normal(ks[2], (num_blocks, Kt, hidden, hidden), jnp.float32),
        bt=s * jax.random.normal(ks[3], (num_blocks, 1, hidden), jnp.float32),
        ws=s * jax.random.normal(ks[4], (num_blocks, hidden, hidden), jnp.float32),
        bs=s * jax.random.normal(ks[5], (num_blocks, 1, hidden), jnp.float32),
        w_out=s * jax.random.normal(ks[6], (hidden, cp), jnp.float32),
        b_out=s * jax.random.normal(ks[7], (1, cp), jnp.float32),
    )


if __name__ == "__main__":
    B, T, N = 2, 8, 16                       # batch, history_len, num nodes
    in_channels, out_channels, hidden = 4, 4, 32
    num_blocks, Kt, predict_len = 2, 3, 3

    key = jax.random.PRNGKey(0)
    kx, kp = jax.random.split(key)
    x = jax.random.normal(kx, (B, T, N, in_channels), jnp.float32)

    # deterministic row-normalized adjacency (self loops + ring neighbours)
    eye = jnp.eye(N, dtype=jnp.float32)
    adj = eye + jnp.roll(eye, 1, axis=1) + jnp.roll(eye, -1, axis=1)
    adj = adj / adj.sum(axis=1, keepdims=True)

    params = init_params(kp, in_channels, out_channels, hidden,
                         num_blocks, Kt, predict_len)

    out = sttn_forward(x, adj, params, num_blocks=num_blocks, Kt=Kt,
                       predict_len=predict_len, out_channels=out_channels)
    out = jax.block_until_ready(out)

    ref = sttn_ref(x, adj, params, num_blocks=num_blocks, Kt=Kt,
                   predict_len=predict_len, out_channels=out_channels)
    np.testing.assert_allclose(np.asarray(out), np.asarray(ref),
                               rtol=1e-4, atol=1e-4)
    assert out.shape == (B, predict_len, N, out_channels)
    print("KERNEL_OK")
</pallas_src>

<mosaic_0001>
module attributes {stable_mosaic.version = 11 : i64} {
  func.func @sttn_kernel(%arg0: i32, %arg1: memref<1x128x4xf32, #tpu.memory_space<vmem>>, %arg2: memref<16x16xf32, #tpu.memory_space<vmem>>, %arg3: memref<4x32xf32, #tpu.memory_space<vmem>>, %arg4: memref<1x32xf32, #tpu.memory_space<vmem>>, %arg5: memref<2x3x32x32xf32, #tpu.memory_space<vmem>>, %arg6: memref<2x1x32xf32, #tpu.memory_space<vmem>>, %arg7: memref<2x32x32xf32, #tpu.memory_space<vmem>>, %arg8: memref<2x1x32xf32, #tpu.memory_space<vmem>>, %arg9: memref<32x128xf32, #tpu.memory_space<vmem>>, %arg10: memref<1x128xf32, #tpu.memory_space<vmem>>, %arg11: memref<1x16x128xf32, #tpu.memory_space<vmem>>) attributes {dimension_semantics = [#tpu.dimension_semantics<parallel>], iteration_bounds = array<i64: 2>, scalar_prefetch = 0 : i64, scratch_operands = 0 : i64, tpu.core_type = #tpu.core_type<tc>, window_params = [{transform_indices = @transform_0, window_bounds = array<i64: 1, 128, 4>}, {pipeline_mode = #tpu.pipeline_mode<synchronous>, transform_indices = @transform_1, window_bounds = array<i64: 16, 16>}, {pipeline_mode = #tpu.pipeline_mode<synchronous>, transform_indices = @transform_2, window_bounds = array<i64: 4, 32>}, {pipeline_mode = #tpu.pipeline_mode<synchronous>, transform_indices = @transform_3, window_bounds = array<i64: 1, 32>}, {pipeline_mode = #tpu.pipeline_mode<synchronous>, transform_indices = @transform_4, window_bounds = array<i64: 2, 3, 32, 32>}, {pipeline_mode = #tpu.pipeline_mode<synchronous>, transform_indices = @transform_5, window_bounds = array<i64: 2, 1, 32>}, {pipeline_mode = #tpu.pipeline_mode<synchronous>, transform_indices = @transform_6, window_bounds = array<i64: 2, 32, 32>}, {pipeline_mode = #tpu.pipeline_mode<synchronous>, transform_indices = @transform_7, window_bounds = array<i64: 2, 1, 32>}, {pipeline_mode = #tpu.pipeline_mode<synchronous>, transform_indices = @transform_8, window_bounds = array<i64: 32, 128>}, {pipeline_mode = #tpu.pipeline_mode<synchronous>, transform_indices = @transform_9, window_bounds = array<i64: 1, 128>}, {transform_indices = @transform_10, window_bounds = array<i64: 1, 16, 128>}]} {
    %c0 = arith.constant 0 : index
    %c0_0 = arith.constant 0 : index
    %c0_1 = arith.constant 0 : index
    %0 = vector.load %arg1[%c0, %c0_0, %c0_1] : memref<1x128x4xf32, #tpu.memory_space<vmem>>, vector<1x128x4xf32>
    %1 = vector.shape_cast %0 : vector<1x128x4xf32> to vector<128x4xf32>
    %c0_2 = arith.constant 0 : index
    %c0_3 = arith.constant 0 : index
    %2 = vector.load %arg2[%c0_2, %c0_3] : memref<16x16xf32, #tpu.memory_space<vmem>>, vector<16x16xf32>
    %c0_4 = arith.constant 0 : index
    %c0_5 = arith.constant 0 : index
    %3 = vector.load %arg3[%c0_4, %c0_5] : memref<4x32xf32, #tpu.memory_space<vmem>>, vector<4x32xf32>
    %cst = arith.constant dense<0.000000e+00> : vector<128x32xf32>
    %4 = tpu.matmul %1, %3, %cst {dimension_numbers = #tpu.dot_dimension_numbers<[1], [0], [0], [1], [0, 0, 1, 1], [], []>} : vector<128x4xf32>, vector<4x32xf32>, vector<128x32xf32> -> vector<128x32xf32>
    %c0_6 = arith.constant 0 : index
    %c0_7 = arith.constant 0 : index
    %5 = vector.load %arg4[%c0_6, %c0_7] : memref<1x32xf32, #tpu.memory_space<vmem>>, vector<1x32xf32>
    %6 = vector.broadcast %5 : vector<1x32xf32> to vector<128x32xf32>
    %7 = arith.addf %4, %6 : vector<128x32xf32>
    %8 = vector.shape_cast %7 : vector<128x32xf32> to vector<8x16x32xf32>
    %cst_8 = arith.constant 0.000000e+00 : f32
    %9 = vector.broadcast %cst_8 : f32 to vector<1x16x32xf32>
    %10 = tpu.concatenate %9, %8, %9 in 0 : vector<1x16x32xf32>, vector<8x16x32xf32>, vector<1x16x32xf32> -> vector<10x16x32xf32>
    %11 = vector.extract_strided_slice %10 {offsets = [0, 0, 0], sizes = [8, 16, 32], strides = [1, 1, 1]} : vector<10x16x32xf32> to vector<8x16x32xf32>
    %12 = vector.shape_cast %11 : vector<8x16x32xf32> to vector<128x32xf32>
    %c0_9 = arith.constant 0 : index
    %c0_10 = arith.constant 0 : index
    %c0_11 = arith.constant 0 : index
    %c0_12 = arith.constant 0 : index
    %13 = vector.load %arg5[%c0_9, %c0_10, %c0_11, %c0_12] : memref<2x3x32x32xf32, #tpu.memory_space<vmem>>, vector<1x1x32x32xf32>
    %14 = vector.shape_cast %13 : vector<1x1x32x32xf32> to vector<32x32xf32>
    %cst_13 = arith.constant dense<0.000000e+00> : vector<128x32xf32>
    %15 = tpu.matmul %12, %14, %cst_13 {dimension_numbers = #tpu.dot_dimension_numbers<[1], [0], [0], [1], [0, 0, 1, 1], [], []>} : vector<128x32xf32>, vector<32x32xf32>, vector<128x32xf32> -> vector<128x32xf32>
    %16 = vector.extract_strided_slice %10 {offsets = [1, 0, 0], sizes = [8, 16, 32], strides = [1, 1, 1]} : vector<10x16x32xf32> to vector<8x16x32xf32>
    %17 = vector.shape_cast %16 : vector<8x16x32xf32> to vector<128x32xf32>
    %c0_14 = arith.constant 0 : index
    %c1 = arith.constant 1 : index
    %c0_15 = arith.constant 0 : index
    %c0_16 = arith.constant 0 : index
    %18 = vector.load %arg5[%c0_14, %c1, %c0_15, %c0_16] : memref<2x3x32x32xf32, #tpu.memory_space<vmem>>, vector<1x1x32x32xf32>
    %19 = vector.shape_cast %18 : vector<1x1x32x32xf32> to vector<32x32xf32>
    %cst_17 = arith.constant dense<0.000000e+00> : vector<128x32xf32>
    %20 = tpu.matmul %17, %19, %cst_17 {dimension_numbers = #tpu.dot_dimension_numbers<[1], [0], [0], [1], [0, 0, 1, 1], [], []>} : vector<128x32xf32>, vector<32x32xf32>, vector<128x32xf32> -> vector<128x32xf32>
    %21 = arith.addf %15, %20 : vector<128x32xf32>
    %22 = vector.extract_strided_slice %10 {offsets = [2, 0, 0], sizes = [8, 16, 32], strides = [1, 1, 1]} : vector<10x16x32xf32> to vector<8x16x32xf32>
    %23 = vector.shape_cast %22 : vector<8x16x32xf32> to vector<128x32xf32>
    %c0_18 = arith.constant 0 : index
    %c2 = arith.constant 2 : index
    %c0_19 = arith.constant 0 : index
    %c0_20 = arith.constant 0 : index
    %24 = vector.load %arg5[%c0_18, %c2, %c0_19, %c0_20] : memref<2x3x32x32xf32, #tpu.memory_space<vmem>>, vector<1x1x32x32xf32>
    %25 = vector.shape_cast %24 : vector<1x1x32x32xf32> to vector<32x32xf32>
    %cst_21 = arith.constant dense<0.000000e+00> : vector<128x32xf32>
    %26 = tpu.matmul %23, %25, %cst_21 {dimension_numbers = #tpu.dot_dimension_numbers<[1], [0], [0], [1], [0, 0, 1, 1], [], []>} : vector<128x32xf32>, vector<32x32xf32>, vector<128x32xf32> -> vector<128x32xf32>
    %27 = arith.addf %21, %26 : vector<128x32xf32>
    %c0_22 = arith.constant 0 : index
    %c0_23 = arith.constant 0 : index
    %c0_24 = arith.constant 0 : index
    %28 = vector.load %arg6[%c0_22, %c0_23, %c0_24] : memref<2x1x32xf32, #tpu.memory_space<vmem>>, vector<1x1x32xf32>
    %29 = vector.shape_cast %28 : vector<1x1x32xf32> to vector<1x32xf32>
    %30 = vector.broadcast %29 : vector<1x32xf32> to vector<128x32xf32>
    %31 = arith.addf %27, %30 : vector<128x32xf32>
    %cst_25 = arith.constant 0.000000e+00 : f32
    %32 = vector.broadcast %cst_25 : f32 to vector<128x32xf32>
    %33 = arith.maximumf %31, %32 : vector<128x32xf32>
    %34 = vector.shape_cast %33 : vector<128x32xf32> to vector<8x16x32xf32>
    %35 = vector.extract_strided_slice %34 {offsets = [0, 0, 0], sizes = [1, 16, 32], strides = [1, 1, 1]} : vector<8x16x32xf32> to vector<1x16x32xf32>
    %36 = vector.shape_cast %35 : vector<1x16x32xf32> to vector<16x32xf32>
    %cst_26 = arith.constant dense<0.000000e+00> : vector<16x32xf32>
    %37 = tpu.matmul %2, %36, %cst_26 {dimension_numbers = #tpu.dot_dimension_numbers<[1], [0], [0], [1], [0, 0, 1, 1], [], []>} : vector<16x16xf32>, vector<16x32xf32>, vector<16x32xf32> -> vector<16x32xf32>
    %38 = vector.extract_strided_slice %34 {offsets = [1, 0, 0], sizes = [1, 16, 32], strides = [1, 1, 1]} : vector<8x16x32xf32> to vector<1x16x32xf32>
    %39 = vector.shape_cast %38 : vector<1x16x32xf32> to vector<16x32xf32>
    %cst_27 = arith.constant dense<0.000000e+00> : vector<16x32xf32>
    %40 = tpu.matmul %2, %39, %cst_27 {dimension_numbers = #tpu.dot_dimension_numbers<[1], [0], [0], [1], [0, 0, 1, 1], [], []>} : vector<16x16xf32>, vector<16x32xf32>, vector<16x32xf32> -> vector<16x32xf32>
    %41 = vector.extract_strided_slice %34 {offsets = [2, 0, 0], sizes = [1, 16, 32], strides = [1, 1, 1]} : vector<8x16x32xf32> to vector<1x16x32xf32>
    %42 = vector.shape_cast %41 : vector<1x16x32xf32> to vector<16x32xf32>
    %cst_28 = arith.constant dense<0.000000e+00> : vector<16x32xf32>
    %43 = tpu.matmul %2, %42, %cst_28 {dimension_numbers = #tpu.dot_dimension_numbers<[1], [0], [0], [1], [0, 0, 1, 1], [], []>} : vector<16x16xf32>, vector<16x32xf32>, vector<16x32xf32> -> vector<16x32xf32>
    %44 = vector.extract_strided_slice %34 {offsets = [3, 0, 0], sizes = [1, 16, 32], strides = [1, 1, 1]} : vector<8x16x32xf32> to vector<1x16x32xf32>
    %45 = vector.shape_cast %44 : vector<1x16x32xf32> to vector<16x32xf32>
    %cst_29 = arith.constant dense<0.000000e+00> : vector<16x32xf32>
    %46 = tpu.matmul %2, %45, %cst_29 {dimension_numbers = #tpu.dot_dimension_numbers<[1], [0], [0], [1], [0, 0, 1, 1], [], []>} : vector<16x16xf32>, vector<16x32xf32>, vector<16x32xf32> -> vector<16x32xf32>
    %47 = vector.extract_strided_slice %34 {offsets = [4, 0, 0], sizes = [1, 16, 32], strides = [1, 1, 1]} : vector<8x16x32xf32> to vector<1x16x32xf32>
    %48 = vector.shape_cast %47 : vector<1x16x32xf32> to vector<16x32xf32>
    %cst_30 = arith.constant dense<0.000000e+00> : vector<16x32xf32>
    %49 = tpu.matmul %2, %48, %cst_30 {dimension_numbers = #tpu.dot_dimension_numbers<[1], [0], [0], [1], [0, 0, 1, 1], [], []>} : vector<16x16xf32>, vector<16x32xf32>, vector<16x32xf32> -> vector<16x32xf32>
    %50 = vector.extract_strided_slice %34 {offsets = [5, 0, 0], sizes = [1, 16, 32], strides = [1, 1, 1]} : vector<8x16x32xf32> to vector<1x16x32xf32>
    %51 = vector.shape_cast %50 : vector<1x16x32xf32> to vector<16x32xf32>
    %cst_31 = arith.constant dense<0.000000e+00> : vector<16x32xf32>
    %52 = tpu.matmul %2, %51, %cst_31 {dimension_numbers = #tpu.dot_dimension_numbers<[1], [0], [0], [1], [0, 0, 1, 1], [], []>} : vector<16x16xf32>, vector<16x32xf32>, vector<16x32xf32> -> vector<16x32xf32>
    %53 = vector.extract_strided_slice %34 {offsets = [6, 0, 0], sizes = [1, 16, 32], strides = [1, 1, 1]} : vector<8x16x32xf32> to vector<1x16x32xf32>
    %54 = vector.shape_cast %53 : vector<1x16x32xf32> to vector<16x32xf32>
    %cst_32 = arith.constant dense<0.000000e+00> : vector<16x32xf32>
    %55 = tpu.matmul %2, %54, %cst_32 {dimension_numbers = #tpu.dot_dimension_numbers<[1], [0], [0], [1], [0, 0, 1, 1], [], []>} : vector<16x16xf32>, vector<16x32xf32>, vector<16x32xf32> -> vector<16x32xf32>
    %56 = vector.extract_strided_slice %34 {offsets = [7, 0, 0], sizes = [1, 16, 32], strides = [1, 1, 1]} : vector<8x16x32xf32> to vector<1x16x32xf32>
    %57 = vector.shape_cast %56 : vector<1x16x32xf32> to vector<16x32xf32>
    %cst_33 = arith.constant dense<0.000000e+00> : vector<16x32xf32>
    %58 = tpu.matmul %2, %57, %cst_33 {dimension_numbers = #tpu.dot_dimension_numbers<[1], [0], [0], [1], [0, 0, 1, 1], [], []>} : vector<16x16xf32>, vector<16x32xf32>, vector<16x32xf32> -> vector<16x32xf32>
    %59 = tpu.concatenate %37, %40, %43, %46, %49, %52, %55, %58 in 0 : vector<16x32xf32>, vector<16x32xf32>, vector<16x32xf32>, vector<16x32xf32>, vector<16x32xf32>, vector<16x32xf32>, vector<16x32xf32>, vector<16x32xf32> -> vector<128x32xf32>
    %c0_34 = arith.constant 0 : index
    %c0_35 = arith.constant 0 : index
    %c0_36 = arith.constant 0 : index
    %60 = vector.load %arg7[%c0_34, %c0_35, %c0_36] : memref<2x32x32xf32, #tpu.memory_space<vmem>>, vector<1x32x32xf32>
    %61 = vector.shape_cast %60 : vector<1x32x32xf32> to vector<32x32xf32>
    %cst_37 = arith.constant dense<0.000000e+00> : vector<128x32xf32>
    %62 = tpu.matmul %59, %61, %cst_37 {dimension_numbers = #tpu.dot_dimension_numbers<[1], [0], [0], [1], [0, 0, 1, 1], [], []>} : vector<128x32xf32>, vector<32x32xf32>, vector<128x32xf32> -> vector<128x32xf32>
    %c0_38 = arith.constant 0 : index
    %c0_39 = arith.constant 0 : index
    %c0_40 = arith.constant 0 : index
    %63 = vector.load %arg8[%c0_38, %c0_39, %c0_40] : memref<2x1x32xf32, #tpu.memory_space<vmem>>, vector<1x1x32xf32>
    %64 = vector.shape_cast %63 : vector<1x1x32xf32> to vector<1x32xf32>
    %65 = vector.broadcast %64 : vector<1x32xf32> to vector<128x32xf32>
    %66 = arith.addf %62, %65 : vector<128x32xf32>
    %67 = arith.addf %66, %7 : vector<128x32xf32>
    %cst_41 = arith.constant 0.000000e+00 : f32
    %68 = vector.broadcast %cst_41 : f32 to vector<128x32xf32>
    %69 = arith.maximumf %67, %68 : vector<128x32xf32>
    %70 = vector.shape_cast %69 : vector<128x32xf32> to vector<8x16x32xf32>
    %cst_42 = arith.constant 0.000000e+00 : f32
    %71 = vector.broadcast %cst_42 : f32 to vector<1x16x32xf32>
    %72 = tpu.concatenate %71, %70, %71 in 0 : vector<1x16x32xf32>, vector<8x16x32xf32>, vector<1x16x32xf32> -> vector<10x16x32xf32>
    %73 = vector.extract_strided_slice %72 {offsets = [0, 0, 0], sizes = [8, 16, 32], strides = [1, 1, 1]} : vector<10x16x32xf32> to vector<8x16x32xf32>
    %74 = vector.shape_cast %73 : vector<8x16x32xf32> to vector<128x32xf32>
    %c1_43 = arith.constant 1 : index
    %c0_44 = arith.constant 0 : index
    %c0_45 = arith.constant 0 : index
    %c0_46 = arith.constant 0 : index
    %75 = vector.load %arg5[%c1_43, %c0_44, %c0_45, %c0_46] : memref<2x3x32x32xf32, #tpu.memory_space<vmem>>, vector<1x1x32x32xf32>
    %76 = vector.shape_cast %75 : vector<1x1x32x32xf32> to vector<32x32xf32>
    %cst_47 = arith.constant dense<0.000000e+00> : vector<128x32xf32>
    %77 = tpu.matmul %74, %76, %cst_47 {dimension_numbers = #tpu.dot_dimension_numbers<[1], [0], [0], [1], [0, 0, 1, 1], [], []>} : vector<128x32xf32>, vector<32x32xf32>, vector<128x32xf32> -> vector<128x32xf32>
    %78 = vector.extract_strided_slice %72 {offsets = [1, 0, 0], sizes = [8, 16, 32], strides = [1, 1, 1]} : vector<10x16x32xf32> to vector<8x16x32xf32>
    %79 = vector.shape_cast %78 : vector<8x16x32xf32> to vector<128x32xf32>
    %c1_48 = arith.constant 1 : index
    %c1_49 = arith.constant 1 : index
    %c0_50 = arith.constant 0 : index
    %c0_51 = arith.constant 0 : index
    %80 = vector.load %arg5[%c1_48, %c1_49, %c0_50, %c0_51] : memref<2x3x32x32xf32, #tpu.memory_space<vmem>>, vector<1x1x32x32xf32>
    %81 = vector.shape_cast %80 : vector<1x1x32x32xf32> to vector<32x32xf32>
    %cst_52 = arith.constant dense<0.000000e+00> : vector<128x32xf32>
    %82 = tpu.matmul %79, %81, %cst_52 {dimension_numbers = #tpu.dot_dimension_numbers<[1], [0], [0], [1], [0, 0, 1, 1], [], []>} : vector<128x32xf32>, vector<32x32xf32>, vector<128x32xf32> -> vector<128x32xf32>
    %83 = arith.addf %77, %82 : vector<128x32xf32>
    %84 = vector.extract_strided_slice %72 {offsets = [2, 0, 0], sizes = [8, 16, 32], strides = [1, 1, 1]} : vector<10x16x32xf32> to vector<8x16x32xf32>
    %85 = vector.shape_cast %84 : vector<8x16x32xf32> to vector<128x32xf32>
    %c1_53 = arith.constant 1 : index
    %c2_54 = arith.constant 2 : index
    %c0_55 = arith.constant 0 : index
    %c0_56 = arith.constant 0 : index
    %86 = vector.load %arg5[%c1_53, %c2_54, %c0_55, %c0_56] : memref<2x3x32x32xf32, #tpu.memory_space<vmem>>, vector<1x1x32x32xf32>
    %87 = vector.shape_cast %86 : vector<1x1x32x32xf32> to vector<32x32xf32>
    %cst_57 = arith.constant dense<0.000000e+00> : vector<128x32xf32>
    %88 = tpu.matmul %85, %87, %cst_57 {dimension_numbers = #tpu.dot_dimension_numbers<[1], [0], [0], [1], [0, 0, 1, 1], [], []>} : vector<128x32xf32>, vector<32x32xf32>, vector<128x32xf32> -> vector<128x32xf32>
    %89 = arith.addf %83, %88 : vector<128x32xf32>
    %c1_58 = arith.constant 1 : index
    %c0_59 = arith.constant 0 : index
    %c0_60 = arith.constant 0 : index
    %90 = vector.load %arg6[%c1_58, %c0_59, %c0_60] : memref<2x1x32xf32, #tpu.memory_space<vmem>>, vector<1x1x32xf32>
    %91 = vector.shape_cast %90 : vector<1x1x32xf32> to vector<1x32xf32>
    %92 = vector.broadcast %91 : vector<1x32xf32> to vector<128x32xf32>
    %93 = arith.addf %89, %92 : vector<128x32xf32>
    %cst_61 = arith.constant 0.000000e+00 : f32
    %94 = vector.broadcast %cst_61 : f32 to vector<128x32xf32>
    %95 = arith.maximumf %93, %94 : vector<128x32xf32>
    %96 = vector.shape_cast %95 : vector<128x32xf32> to vector<8x16x32xf32>
    %97 = vector.extract_strided_slice %96 {offsets = [0, 0, 0], sizes = [1, 16, 32], strides = [1, 1, 1]} : vector<8x16x32xf32> to vector<1x16x32xf32>
    %98 = vector.shape_cast %97 : vector<1x16x32xf32> to vector<16x32xf32>
    %cst_62 = arith.constant dense<0.000000e+00> : vector<16x32xf32>
    %99 = tpu.matmul %2, %98, %cst_62 {dimension_numbers = #tpu.dot_dimension_numbers<[1], [0], [0], [1], [0, 0, 1, 1], [], []>} : vector<16x16xf32>, vector<16x32xf32>, vector<16x32xf32> -> vector<16x32xf32>
    %100 = vector.extract_strided_slice %96 {offsets = [1, 0, 0], sizes = [1, 16, 32], strides = [1, 1, 1]} : vector<8x16x32xf32> to vector<1x16x32xf32>
    %101 = vector.shape_cast %100 : vector<1x16x32xf32> to vector<16x32xf32>
    %cst_63 = arith.constant dense<0.000000e+00> : vector<16x32xf32>
    %102 = tpu.matmul %2, %101, %cst_63 {dimension_numbers = #tpu.dot_dimension_numbers<[1], [0], [0], [1], [0, 0, 1, 1], [], []>} : vector<16x16xf32>, vector<16x32xf32>, vector<16x32xf32> -> vector<16x32xf32>
    %103 = vector.extract_strided_slice %96 {offsets = [2, 0, 0], sizes = [1, 16, 32], strides = [1, 1, 1]} : vector<8x16x32xf32> to vector<1x16x32xf32>
    %104 = vector.shape_cast %103 : vector<1x16x32xf32> to vector<16x32xf32>
    %cst_64 = arith.constant dense<0.000000e+00> : vector<16x32xf32>
    %105 = tpu.matmul %2, %104, %cst_64 {dimension_numbers = #tpu.dot_dimension_numbers<[1], [0], [0], [1], [0, 0, 1, 1], [], []>} : vector<16x16xf32>, vector<16x32xf32>, vector<16x32xf32> -> vector<16x32xf32>
    %106 = vector.extract_strided_slice %96 {offsets = [3, 0, 0], sizes = [1, 16, 32], strides = [1, 1, 1]} : vector<8x16x32xf32> to vector<1x16x32xf32>
    %107 = vector.shape_cast %106 : vector<1x16x32xf32> to vector<16x32xf32>
    %cst_65 = arith.constant dense<0.000000e+00> : vector<16x32xf32>
    %108 = tpu.matmul %2, %107, %cst_65 {dimension_numbers = #tpu.dot_dimension_numbers<[1], [0], [0], [1], [0, 0, 1, 1], [], []>} : vector<16x16xf32>, vector<16x32xf32>, vector<16x32xf32> -> vector<16x32xf32>
    %109 = vector.extract_strided_slice %96 {offsets = [4, 0, 0], sizes = [1, 16, 32], strides = [1, 1, 1]} : vector<8x16x32xf32> to vector<1x16x32xf32>
    %110 = vector.shape_cast %109 : vector<1x16x32xf32> to vector<16x32xf32>
    %cst_66 = arith.constant dense<0.000000e+00> : vector<16x32xf32>
    %111 = tpu.matmul %2, %110, %cst_66 {dimension_numbers = #tpu.dot_dimension_numbers<[1], [0], [0], [1], [0, 0, 1, 1], [], []>} : vector<16x16xf32>, vector<16x32xf32>, vector<16x32xf32> -> vector<16x32xf32>
    %112 = vector.extract_strided_slice %96 {offsets = [5, 0, 0], sizes = [1, 16, 32], strides = [1, 1, 1]} : vector<8x16x32xf32> to vector<1x16x32xf32>
    %113 = vector.shape_cast %112 : vector<1x16x32xf32> to vector<16x32xf32>
    %cst_67 = arith.constant dense<0.000000e+00> : vector<16x32xf32>
    %114 = tpu.matmul %2, %113, %cst_67 {dimension_numbers = #tpu.dot_dimension_numbers<[1], [0], [0], [1], [0, 0, 1, 1], [], []>} : vector<16x16xf32>, vector<16x32xf32>, vector<16x32xf32> -> vector<16x32xf32>
    %115 = vector.extract_strided_slice %96 {offsets = [6, 0, 0], sizes = [1, 16, 32], strides = [1, 1, 1]} : vector<8x16x32xf32> to vector<1x16x32xf32>
    %116 = vector.shape_cast %115 : vector<1x16x32xf32> to vector<16x32xf32>
    %cst_68 = arith.constant dense<0.000000e+00> : vector<16x32xf32>
    %117 = tpu.matmul %2, %116, %cst_68 {dimension_numbers = #tpu.dot_dimension_numbers<[1], [0], [0], [1], [0, 0, 1, 1], [], []>} : vector<16x16xf32>, vector<16x32xf32>, vector<16x32xf32> -> vector<16x32xf32>
    %118 = vector.extract_strided_slice %96 {offsets = [7, 0, 0], sizes = [1, 16, 32], strides = [1, 1, 1]} : vector<8x16x32xf32> to vector<1x16x32xf32>
    %119 = vector.shape_cast %118 : vector<1x16x32xf32> to vector<16x32xf32>
    %cst_69 = arith.constant dense<0.000000e+00> : vector<16x32xf32>
    %120 = tpu.matmul %2, %119, %cst_69 {dimension_numbers = #tpu.dot_dimension_numbers<[1], [0], [0], [1], [0, 0, 1, 1], [], []>} : vector<16x16xf32>, vector<16x32xf32>, vector<16x32xf32> -> vector<16x32xf32>
    %121 = tpu.concatenate %99, %102, %105, %108, %111, %114, %117, %120 in 0 : vector<16x32xf32>, vector<16x32xf32>, vector<16x32xf32>, vector<16x32xf32>, vector<16x32xf32>, vector<16x32xf32>, vector<16x32xf32>, vector<16x32xf32> -> vector<128x32xf32>
    %c1_70 = arith.constant 1 : index
    %c0_71 = arith.constant 0 : index
    %c0_72 = arith.constant 0 : index
    %122 = vector.load %arg7[%c1_70, %c0_71, %c0_72] : memref<2x32x32xf32, #tpu.memory_space<vmem>>, vector<1x32x32xf32>
    %123 = vector.shape_cast %122 : vector<1x32x32xf32> to vector<32x32xf32>
    %cst_73 = arith.constant dense<0.000000e+00> : vector<128x32xf32>
    %124 = tpu.matmul %121, %123, %cst_73 {dimension_numbers = #tpu.dot_dimension_numbers<[1], [0], [0], [1], [0, 0, 1, 1], [], []>} : vector<128x32xf32>, vector<32x32xf32>, vector<128x32xf32> -> vector<128x32xf32>
    %c1_74 = arith.constant 1 : index
    %c0_75 = arith.constant 0 : index
    %c0_76 = arith.constant 0 : index
    %125 = vector.load %arg8[%c1_74, %c0_75, %c0_76] : memref<2x1x32xf32, #tpu.memory_space<vmem>>, vector<1x1x32xf32>
    %126 = vector.shape_cast %125 : vector<1x1x32xf32> to vector<1x32xf32>
    %127 = vector.broadcast %126 : vector<1x32xf32> to vector<128x32xf32>
    %128 = arith.addf %124, %127 : vector<128x32xf32>
    %129 = arith.addf %128, %69 : vector<128x32xf32>
    %cst_77 = arith.constant 0.000000e+00 : f32
    %130 = vector.broadcast %cst_77 : f32 to vector<128x32xf32>
    %131 = arith.maximumf %129, %130 : vector<128x32xf32>
    %132 = vector.shape_cast %131 : vector<128x32xf32> to vector<8x16x32xf32>
    %133 = vector.extract_strided_slice %132 {offsets = [7, 0, 0], sizes = [1, 16, 32], strides = [1, 1, 1]} : vector<8x16x32xf32> to vector<1x16x32xf32>
    %134 = vector.shape_cast %133 : vector<1x16x32xf32> to vector<16x32xf32>
    %c0_78 = arith.constant 0 : index
    %c0_79 = arith.constant 0 : index
    %135 = vector.load %arg9[%c0_78, %c0_79] : memref<32x128xf32, #tpu.memory_space<vmem>>, vector<32x128xf32>
    %cst_80 = arith.constant dense<0.000000e+00> : vector<16x128xf32>
    %136 = tpu.matmul %134, %135, %cst_80 {dimension_numbers = #tpu.dot_dimension_numbers<[1], [0], [0], [1], [0, 0, 1, 1], [], []>} : vector<16x32xf32>, vector<32x128xf32>, vector<16x128xf32> -> vector<16x128xf32>
    %c0_81 = arith.constant 0 : index
    %c0_82 = arith.constant 0 : index
    %137 = vector.load %arg10[%c0_81, %c0_82] : memref<1x128xf32, #tpu.memory_space<vmem>>, vector<1x128xf32>
    %138 = vector.broadcast %137 : vector<1x128xf32> to vector<16x128xf32>
    %139 = arith.addf %136, %138 : vector<16x128xf32>
    %c0_83 = arith.constant 0 : index
    %c0_84 = arith.constant 0 : index
    %c0_85 = arith.constant 0 : index
    %140 = vector.load %arg11[%c0_83, %c0_84, %c0_85] : memref<1x16x128xf32, #tpu.memory_space<vmem>>, vector<1x16x128xf32>
    %141 = vector.shape_cast %140 : vector<1x16x128xf32> to vector<16x128xf32>
    %142 = vector.shape_cast %139 : vector<16x128xf32> to vector<1x16x128xf32>
    tpu.vector_store %arg11[%c0_83, %c0_84, %c0_85], %142 {strides = array<i32>} : memref<1x16x128xf32, #tpu.memory_space<vmem>>, vector<1x16x128xf32>,
    return
  }
  func.func @transform_0(%arg0: i32) -> (i32, i32, i32) {
    %c0_i32 = arith.constant 0 : i32
    %c0_i32_0 = arith.constant 0 : i32
    %c0_i32_1 = arith.constant 0 : i32
    return %arg0, %c0_i32, %c0_i32_0 : i32, i32, i32
  }
  func.func @transform_1(%arg0: i32) -> (i32, i32) {
    %c0_i32 = arith.constant 0 : i32
    %c0_i32_0 = arith.constant 0 : i32
    %c0_i32_1 = arith.constant 0 : i32
    return %c0_i32, %c0_i32_0 : i32, i32
  }
  func.func @transform_2(%arg0: i32) -> (i32, i32) {
    %c0_i32 = arith.constant 0 : i32
    %c0_i32_0 = arith.constant 0 : i32
    %c0_i32_1 = arith.constant 0 : i32
    return %c0_i32, %c0_i32_0 : i32, i32
  }
  func.func @transform_3(%arg0: i32) -> (i32, i32) {
    %c0_i32 = arith.constant 0 : i32
    %c0_i32_0 = arith.constant 0 : i32
    %c0_i32_1 = arith.constant 0 : i32
    return %c0_i32, %c0_i32_0 : i32, i32
  }
  func.func @transform_4(%arg0: i32) -> (i32, i32, i32, i32) {
    %c0_i32 = arith.constant 0 : i32
    %c0_i32_0 = arith.constant 0 : i32
    %c0_i32_1 = arith.constant 0 : i32
    %c0_i32_2 = arith.constant 0 : i32
    %c0_i32_3 = arith.constant 0 : i32
    return %c0_i32, %c0_i32_0, %c0_i32_1, %c0_i32_2 : i32, i32, i32, i32
  }
  func.func @transform_5(%arg0: i32) -> (i32, i32, i32) {
    %c0_i32 = arith.constant 0 : i32
    %c0_i32_0 = arith.constant 0 : i32
    %c0_i32_1 = arith.constant 0 : i32
    %c0_i32_2 = arith.constant 0 : i32
    return %c0_i32, %c0_i32_0, %c0_i32_1 : i32, i32, i32
  }
  func.func @transform_6(%arg0: i32) -> (i32, i32, i32) {
    %c0_i32 = arith.constant 0 : i32
    %c0_i32_0 = arith.constant 0 : i32
    %c0_i32_1 = arith.constant 0 : i32
    %c0_i32_2 = arith.constant 0 : i32
    return %c0_i32, %c0_i32_0, %c0_i32_1 : i32, i32, i32
  }
  func.func @transform_7(%arg0: i32) -> (i32, i32, i32) {
    %c0_i32 = arith.constant 0 : i32
    %c0_i32_0 = arith.constant 0 : i32
    %c0_i32_1 = arith.constant 0 : i32
    %c0_i32_2 = arith.constant 0 : i32
    return %c0_i32, %c0_i32_0, %c0_i32_1 : i32, i32, i32
  }
  func.func @transform_8(%arg0: i32) -> (i32, i32) {
    %c0_i32 = arith.constant 0 : i32
    %c0_i32_0 = arith.constant 0 : i32
    %c0_i32_1 = arith.constant 0 : i32
    return %c0_i32, %c0_i32_0 : i32, i32
  }
  func.func @transform_9(%arg0: i32) -> (i32, i32) {
    %c0_i32 = arith.constant 0 : i32
    %c0_i32_0 = arith.constant 0 : i32
    %c0_i32_1 = arith.constant 0 : i32
    return %c0_i32, %c0_i32_0 : i32, i32
  }
  func.func @transform_10(%arg0: i32) -> (i32, i32, i32) {
    %c0_i32 = arith.constant 0 : i32
    %c0_i32_0 = arith.constant 0 : i32
    %c0_i32_1 = arith.constant 0 : i32
    return %arg0, %c0_i32, %c0_i32_0 : i32, i32, i32
  }
}

</mosaic_0001>

<bundles_post_ra>
// kernel: tpu_custom_call.1
= control target key start
LH: loop header
LB: loop body
LE: loop exit
PB: predicated region body
PF: predicated region fallthrough
CT: control target
= control target key end

     0   :  { %s5788_s0 = inlined_call_operand.vmem [shape: f32[2,128,4], index: 0, kind: input, shape index: {}]   ;;  %s5789_s1 = inlined_call_operand.hbm [shape: f32[16,16], index: 1, kind: input, shape index: {}]   ;;  %s5790_s2 = inlined_call_operand.hbm [shape: f32[4,32], index: 2, kind: input, shape index: {}]   ;;  %s5791_s3 = inlined_call_operand.hbm [shape: f32[1,32], index: 3, kind: input, shape index: {}]   ;;  %s5792_s4 = inlined_call_operand.vmem [shape: f32[2,3,32,32], index: 4, kind: input, shape index: {}]   ;;  %s5793_s5 = inlined_call_operand.vmem [shape: f32[2,1,32], index: 5, kind: input, shape index: {}]   ;;  %s5794_s6 = inlined_call_operand.vmem [shape: f32[2,32,32], index: 6, kind: input, shape index: {}]   ;;  %s5795_s7 = inlined_call_operand.hbm [shape: f32[2,1,32], index: 7, kind: input, shape index: {}]   ;;  %s5796_s8 = inlined_call_operand.vmem [shape: f32[32,128], index: 8, kind: input, shape index: {}]   ;;  %s5797_s9 = inlined_call_operand.vmem [shape: f32[1,128], index: 9, kind: input, shape index: {}]   ;;  %s5798_s10 = inlined_call_operand.hbm [shape: f32[2,16,128], index: 10, kind: output, shape index: {}]  }
   0x1   :  { %5806 = sst [smem:[#allocation19_spill]] %s5790_s2 }
   0x2   :  { %15 = vsyncpa [#allocation3], 0 }
   0x3   :  { %16 = vsyncpa [#allocation6], 0 }
   0x4   :  { %17 = vsyncpa [#allocation9], 0 }
   0x5   :  { %18 = vsyncpa [#allocation4], 0 }
   0x6   :  { %20 = vsyncpa [#allocation4 + $0x1], 0  ;;  %s5017_s13 = smov 0   ;;  %s5019_s14 = smov 0  }
   0x7   :  { %s5021_s15 = smov 0   ;;  %s5023_s16 = smov 0  }
   0x8 LB: > { %5807 = sst [smem:[#allocation15_spill]] %s4944_s15  ;;  %s5038_s17 = sadd.s32 4294967295, %s4948_s16   ;;  %s4948_s16 = sphi %s5023_s16, %s5827_s16   ;;  %s4944_s15 = sphi %s5021_s15, %s5829_s15   ;;  %s4940_s14 = sphi %s5019_s14, %s5831_s14   ;;  %s4936_s13 = sphi %s5017_s13, %s5830_s13  }
   0x9   : > { %s3597_s18 = sadd.s32 4294967294, %s4948_s16   ;;  %s5042_s19 = sadd.s32 1, %s4948_s16  }
   0xa   : > { %5808 = sst [smem:[#allocation16_spill]] %s5042_s19  ;;  %s248_s20 = sadd.s32 1, %s4944_s15 }
   0xb   : > { %s245_s21 = ssub.s32 %s4948_s16, %s5042_s19  ;;  %p258_p0 = scmp.ne.s32.totalorder %s4944_s15, %s4940_s14 }
   0xc   : > { %p246_p1 = scmp.eq.s32.totalorder %s245_s21, 0  ;;  %p259_p2 = scmp.eq.s32.totalorder %s5038_s17, 1 }
   0xd   : > { %p264_p3 = scmp.ne.s32.totalorder %s4940_s14, %s4936_s13  ;;  %p265_p4 = scmp.eq.s32.totalorder %s3597_s18, 1 }
   0xe   : > { %s5053_s22 = scalar_select %p246_p1, %s4944_s15, %s248_s20  }
   0xf   : > { %p5055_p5 = por %p259_p2, %p258_p0  ;;  %p5059_p6 = por %p265_p4, %p264_p3 }
  0x10   : > { %5809 = sst [smem:[#allocation17_spill]] %s5053_s22  ;;  %p3598_p7 = scmp.ge.s32.totalorder %s4948_s16, 1 }
  0x11   : > { %s5810_s23 = scalar_select %p5055_p5, 1, 0 }
  0x12   : > { %s5811_s24 = scalar_select %p5059_p6, 1, 0 }
  0x13   : > { %p272_p8 = scmp.lt.s32.totalorder %s4948_s16, 3  ;;  %p5800_p9 = scmp.eq.s32.totalorder %s5038_s17, 0 }
  0x14   : > { %5812 = sst [smem:[#allocation18_spill]] %s5811_s24  ;;  %s4950_s26 = smov [#allocation5]  }
  0x15   : > { %p5066_p10 = pnand %p3598_p7, %p272_p8  ;;  %s298_s27 = sshll.u32 %s4950_s26, 4  ;;  %s299_s27 = int_to_ptr.vmem [resolvable:$true] %s298_s27 }
  0x16   : > { %s4951_s28 = smov [#allocation2]   ;;  %s4952_s11 = smov [#allocation7]  }
  0x17   : > { %s5813_s25 = scalar_select %p5066_p10, 1, 0 }
  0x18   : > { %p4693_p11 = pneg %p5066_p10  ;;  %s284_s29 = sshll.u32 %s4951_s28, 4  ;;  %s5078_s29 = int_to_ptr.vmem [resolvable:$true] %s284_s29 }
  0x19   : > { %s5080_s12 = sshll.u32 %s4952_s11, 4  ;;  %s5815_s2 = sld [smem:[#allocation19_spill]]  ;;  %s310_s12 = int_to_ptr.vmem [resolvable:$true] %s5080_s12 }
  0x1a   : > { %p5074_p12 = pnand %p5800_p9, %p4693_p11 }
  0x1c   : > { %p5090_p0 = pneg %p5074_p12 }
  0x1f   : > { %s4762_s21 = scalar_lea.hbm %s5815_s2, 64 }
  0x20   : > { %p4763_p13 = scmp.ne.s32.totalorder %s5815_s2, %s4762_s21  ;;  %p4769_p3 = scmp.lt.u32.totalorder %s4762_s21, %s5815_s2 }
  0x22   : > { %p4765_p1 = pnand %p5090_p0, %p4763_p13 }
  0x24   : > { %p4766_p2 = pneg %p4765_p1 }
  0x26   : > { %p4771_p4 = pnand %p4769_p3, %p4766_p2 }
  0x28   : > { %4774 = shalt.err (!%p4771_p4)
}
  0x29   : > { %s4775_s18 = scalar_lea.vmem %s299_s27, 64  ;;  %p4783_p9 = scmp.lt.s32.totalorder %s299_s27, %s299_s27 }
  0x2a   : > { %p4776_p7 = scmp.ne.s32.totalorder %s299_s27, %s4775_s18  ;;  %p4784_p6 = scmp.lt.s32.totalorder %s4775_s18, %s4775_s18 }
  0x2c   : > { %p4778_p8 = pnand %p4776_p7, %p5090_p0  ;;  %p4785_p5 = por %p4784_p6, %p4783_p9 }
  0x2e   : > { %p4779_p11 = pneg %p4778_p8 }
  0x30   : > { %p4786_p10 = pnand %p4785_p5, %p4779_p11 }
  0x32   : > { %4789 = shalt.err (!%p4786_p10)
}
  0x33   : > { %4699 = dma.hbm_to_vmem [thread:$0]  (!%p5074_p12), %s5815_s2, 64, %s299_s27, [#allocation6]  }
  0x34   : > { %s4790_s26 = scalar_lea.hbm %s5789_s1, 256 }
  0x35   : > { %p4791_p13 = scmp.ne.s32.totalorder %s5789_s1, %s4790_s26  ;;  %p4797_p5 = scmp.lt.u32.totalorder %s4790_s26, %s5789_s1 }
  0x37   : > { %p4793_p1 = pnand %p4791_p13, %p5090_p0 }
  0x39   : > { %p4794_p6 = pneg %p4793_p1 }
  0x3b   : > { %p4799_p9 = pnand %p4797_p5, %p4794_p6 }
  0x3d   : > { %4802 = shalt.err (!%p4799_p9)
}
  0x3e   : > { %s4803_s27 = scalar_lea.vmem %s5078_s29, 256  ;;  %p4811_p4 = scmp.lt.s32.totalorder %s5078_s29, %s5078_s29 }
  0x3f   : > { %p4804_p10 = scmp.ne.s32.totalorder %s5078_s29, %s4803_s27  ;;  %p4812_p7 = scmp.lt.s32.totalorder %s4803_s27, %s4803_s27 }
  0x41   : > { %p4806_p2 = pnand %p4804_p10, %p5090_p0  ;;  %p4813_p8 = por %p4812_p7, %p4811_p4 }
  0x43   : > { %p4807_p3 = pneg %p4806_p2 }
  0x45   : > { %p4814_p11 = pnand %p4813_p8, %p4807_p3 }
  0x47   : > { %4817 = shalt.err (!%p4814_p11)
}
  0x48   : > { %s4953_s19 = smov 128   ;;  %s4954_s24 = smov 8  }
  0x49   : > { %4696 = dma.hbm_to_vmem [thread:$0]  (!%p5074_p12), %s5789_s1, 256, %s5078_s29, [#allocation3], %s4953_s19, %s4953_s19, %s4954_s24  }
  0x4a   : > { %s4818_s26 = scalar_lea.hbm %s5791_s3, 16 }
  0x4b   : > { %p4819_p13 = scmp.ne.s32.totalorder %s5791_s3, %s4818_s26  ;;  %p4825_p5 = scmp.lt.u32.totalorder %s4818_s26, %s5791_s3 }
  0x4d   : > { %p4821_p1 = pnand %p4819_p13, %p5090_p0 }
  0x4f   : > { %p4822_p6 = pneg %p4821_p1 }
  0x51   : > { %p4827_p9 = pnand %p4825_p5, %p4822_p6 }
  0x53   : > { %4830 = shalt.err (!%p4827_p9)
}
  0x54   : > { %s4831_s22 = scalar_lea.vmem %s310_s12, 16  ;;  %s4838_s29 = scalar_lea.vmem %s310_s12, 32 }
  0x55   : > { %p4832_p10 = scmp.ne.s32.totalorder %s310_s12, %s4831_s22  ;;  %p4839_p4 = scmp.lt.s32.totalorder %s310_s12, %s310_s12 }
  0x56   : > { %p4840_p7 = scmp.lt.s32.totalorder %s4838_s29, %s4831_s22 }
  0x57   : > { %p4834_p2 = pnand %p4832_p10, %p5090_p0 }
  0x58   : > { %p4841_p8 = por %p4840_p7, %p4839_p4 }
  0x59   : > { %p4835_p3 = pneg %p4834_p2 }
  0x5b   : > { %p4842_p11 = pnand %p4841_p8, %p4835_p3 }
  0x5d   : > { %4845 = shalt.err (!%p4842_p11)
}
  0x5e   : > { %4702 = dma.hbm_to_vmem [thread:$0]  (!%p5074_p12), %s5791_s3, 16, %s310_s12, [#allocation6]  }
  0x5f   : > { %s4955_s2 = smov [#allocation8]   ;;  %s4846_s26 = scalar_lea.hbm %s5795_s7, 32 }
  0x60   : > { %s328_s20 = sshll.u32 %s4955_s2, 4  ;;  %p4847_p13 = scmp.ne.s32.totalorder %s5795_s7, %s4846_s26  ;;  %s329_s20 = int_to_ptr.vmem [resolvable:$true] %s328_s20 }
  0x61   : > { %p4853_p5 = scmp.lt.u32.totalorder %s4846_s26, %s5795_s7 }
  0x62   : > { %p4849_p1 = pnand %p4847_p13, %p5090_p0 }
  0x64   : > { %p4850_p6 = pneg %p4849_p1 }
  0x66   : > { %p4855_p9 = pnand %p4853_p5, %p4850_p6 }
  0x68   : > { %4858 = shalt.err (!%p4855_p9)
}
  0x69   : > { %s4859_s12 = scalar_lea.vmem %s329_s20, 32  ;;  %p4867_p4 = scmp.lt.s32.totalorder %s329_s20, %s329_s20 }
  0x6a   : > { %p4860_p10 = scmp.ne.s32.totalorder %s329_s20, %s4859_s12  ;;  %p4868_p7 = scmp.lt.s32.totalorder %s4859_s12, %s4859_s12 }
  0x6c   : > { %p4862_p2 = pnand %p4860_p10, %p5090_p0  ;;  %p4869_p8 = por %p4868_p7, %p4867_p4 }
  0x6e   : > { %p4863_p3 = pneg %p4862_p2 }
  0x70   : > { %p4870_p11 = pnand %p4869_p8, %p4863_p3 }
  0x72   : > { %4873 = shalt.err (!%p4870_p11)
}
  0x73   : > { %s4956_s29 = smov 16   ;;  %s4957_s19 = smov 1  }
  0x74   : > { %4705 = dma.hbm_to_vmem [thread:$0]  (!%p5074_p12), %s5795_s7, 32, %s329_s20, [#allocation9], %s4956_s29, %s4956_s29, %s4957_s19  }
  0x75   : > { %p5817_p13 = scmp.ne.s32.totalorder %s5813_s25, 0 }
  0x76   : > { %p5818_p1 = scmp.eq.s32.totalorder (!%p5817_p13), %s5038_s17, 0 }
  0x77   : > { %358 = sbr.rel (%p5817_p13) target bundleno = 2058 (0x80a), region = 60 }
  0x7e   : > { %4919 = dma.done.wait (%p5818_p1), [#allocation3], 256   ;;  %p5819_p0 = pmov %p5818_p1 }
  0x80   : > { %4921 = vsyncadd (%p5819_p0), [#allocation3], 4294967040  ;;  %p5820_p6 = pmov %p5819_p0 }
  0x81   : > { %p5821_p5 = pmov %p5819_p0 }
  0x82   : > { %4923 = dma.done.wait (%p5820_p6), [#allocation6], 80  }
  0x83   : > { %4925 = vsyncadd (%p5821_p5), [#allocation6], 4294967216  ;;  %p5822_p9 = pmov %p5819_p0 }
  0x84   : > { %p5823_p12 = pmov %p5819_p0 }
  0x85   : > { %4927 = dma.done.wait (%p5822_p9), [#allocation9], 32  }
  0x86   : > { %4929 = vsyncadd (%p5823_p12), [#allocation9], 4294967264  ;;  %p408_p10 = scmp.lt.s32.totalorder %s5038_s17, 1  ;;  %vm488_vm0 = vcmask 1043456   ;;  %vm439_vm1 = vcmask 31744   ;;  %v3630_v9 = vld [vmem:[%s5792_s4 + $0x20] sm:$0xff] }
  0x87   : > { %v431_v0 = vld [vmem:[#allocation5] sm:$0xf]  ;;  %v3631_v11 = vld [vmem:[%s5792_s4 + $0x28] sm:$0xff]  ;;  %v3633_v21 = vld [vmem:[%s5792_s4 + $0x38] sm:$0xff]  ;;  %vm646_vm2 = vcmask 261120   ;;  %vm1193_vm3 = vcmask 130048  }
  0x88   : > { %s409_s25 = scalar_select %p408_p10, %s5038_s17, 1  ;;  %4068 = vmatprep.subr.msk.mxu0 %vm488_vm0, %v431_v0  ;;  %4609 = vmatprep.subr.msk.mxu1 %vm488_vm0, %v431_v0  ;;  %v4473_v13 = vpack.c.bf16 %v3631_v11, %v3630_v9  ;;  %v3632_v20 = vld [vmem:[%s5792_s4 + $0x30] sm:$0xff]  ;;  %v637_v23 = vld [vmem:[%s5792_s4] sm:$0xff]  ;;  %v638_v24 = vld [vmem:[%s5792_s4 + $0x8] sm:$0xff] }
  0x89   : > { %4069 = vmatpush3.msk.msra.mxu0 %vm488_vm0, %v431_v0  ;;  %4610 = vmatpush3.msk.msra.mxu1 %vm488_vm0, %v431_v0  ;;  %v4477_v22 = vpack.c.bf16 %v3633_v21, %v3632_v20  ;;  %v4481_v25 = vpack.c.bf16 %v638_v24, %v637_v23  ;;  %v3612_v26 = vld [vmem:[#allocation7] ss:$0 sm:$0xff]  ;;  %v640_v29 = vld [vmem:[%s5792_s4 + $0x18] sm:$0xff]  ;;  %v3664_v37 = vld [vmem:[%s5792_s4 + $0x40] sm:$0xff]  ;;  %s3820_s11 = sshll.u32 %s5038_s17, 8  ;;  %p5824_p3 = scmp.ne.s32.totalorder %s5810_s23, 0 }
  0x8a   : > { %s3819_s30 = sshll.u32 %s409_s25, 7  ;;  %4474 = vmatprep.subr.bf16.mxu1 %v4473_v13  ;;  %v639_v28 = vld [vmem:[%s5792_s4 + $0x10] sm:$0xff]  ;;  %v3665_v38 = vld [vmem:[%s5792_s4 + $0x48] sm:$0xff]  ;;  %s5745_s22 = scalar_lea.hbm %s5798_s10, %s3820_s11 }
  0x8b   : > { %s5185_s15 = scalar_lea.vmem %s5788_s0, %s3819_s30  ;;  %v4485_v35 = vpack.c.bf16 %v640_v29, %v639_v28  ;;  %v4489_v44 = vpack.c.bf16 %v3665_v38, %v3664_v37  ;;  %v5395_v23 = vld [vmem:[#allocation2 + $0x8] sm:$0xff]  ;;  %s405_s30 = sand.u32 1, %s4940_s14  }
  0x8c   : > { %v413_v1 = vld [vmem:[%s5185_s15] sm:$0xff]  ;;  %v414_v2 = vld [vmem:[%s5185_s15 + $0x8] sm:$0xff]  ;;  %v415_v3 = vld [vmem:[%s5185_s15 + $0x10] sm:$0xff]  ;;  %s3609_s28 = sshll.u32 %s405_s30, 4  ;;  %s5747_s12 = scalar_lea.sflag [#allocation4], %s405_s30 }
  0x8d   : > { %4070 = vmatprep.mubr.msk.f32.mxu0 %vm439_vm1, %v413_v1  ;;  %v423_v4 = vld [vmem:[%s5185_s15 + $0x50] sm:$0xff]  ;;  %v416_v5 = vld [vmem:[%s5185_s15 + $0x18] sm:$0xff]  ;;  %v425_v7 = vld [vmem:[%s5185_s15 + $0x60] sm:$0xff]  ;;  %s407_s21 = scalar_lea.vmem [#allocation10], %s3609_s28  ;;  %s4959_s17 = smov [#allocation10]  }
  0x8e   : > { %4071 = vmatmul.mubr.msk.f32.vlgmr.msra.gmra.mrb[0].mxu0 %vm439_vm1, %v414_v2  ;;  %4085 = vmatprep.mubr.msk.f32.mxu1 %vm439_vm1, %v423_v4  ;;  %v424_v6 = vld [vmem:[%s5185_s15 + $0x58] sm:$0xff]  ;;  %v417_v8 = vld [vmem:[%s5185_s15 + $0x20] sm:$0xff]  ;;  %v426_v10 = vld [vmem:[%s5185_s15 + $0x68] sm:$0xff]  ;;  %s3494_s26 = sshll.u32 %s407_s21, 4  ;;  %s4878_s19 = sshll.u32 %s4959_s17, 4  ;;  %s5740_s26 = int_to_ptr.vmem [resolvable:$true] %s3494_s26  ;;  %s4879_s19 = int_to_ptr.vmem [resolvable:$false] %s4878_s19 }
  0x8f   : > { %4073 = vmatprep.mubr.msk.f32.mxu0 %vm439_vm1, %v415_v3  ;;  %4086 = vmatmul.mubr.msk.f32.vlgmr.msra.gmra.mrb[0].mxu1 %vm439_vm1, %v424_v6  ;;  %v427_v12 = vld [vmem:[%s5185_s15 + $0x70] sm:$0xff]  ;;  %v418_v14 = vld [vmem:[%s5185_s15 + $0x28] sm:$0xff]  ;;  %v428_v16 = vld [vmem:[%s5185_s15 + $0x78] sm:$0xff]  ;;  %v4958_v3 = vmov 0.0   ;;  %s4874_s29 = scalar_lea.vmem %s5740_s26, 256  ;;  %s4880_s24 = scalar_lea.vmem %s4879_s19, 512 }
  0x90   : > { %4088 = vmatprep.mubr.msk.f32.mxu1 %vm439_vm1, %v425_v7  ;;  %v419_v15 = vld [vmem:[%s5185_s15 + $0x30] sm:$0xff]  ;;  %4476 = vmatpush3.bf16.msra.mxu1 %v4473_v13  ;;  %v420_v17 = vld [vmem:[%s5185_s15 + $0x38] sm:$0xff]  ;;  %v421_v18 = vld [vmem:[%s5185_s15 + $0x40] sm:$0xff]  ;;  %p4875_p2 = scmp.ne.s32.totalorder %s5740_s26, %s4874_s29  ;;  %p4881_p8 = scmp.lt.s32.totalorder %s5740_s26, %s4879_s19 }
  0x91   : > { %v422_v19 = vld [vmem:[%s5185_s15 + $0x48] sm:$0xff]  ;;  %4478 = vmatprep.subr.bf16.mxu1 %v4477_v22  ;;  %v3666_v1 = vld [vmem:[%s5792_s4 + $0x50] sm:$0xff]  ;;  %v3667_v2 = vld [vmem:[%s5792_s4 + $0x58] sm:$0xff]  ;;  %p4882_p11 = scmp.lt.s32.totalorder %s4880_s24, %s4874_s29 }
  0x92   : > { %4074 = vmatmul.mubr.msk.f32.gmra.mrb[2].mxu0 %vm439_vm1, %v416_v5  ;;  %v4493_v4 = vpack.c.bf16 %v3667_v2, %v3666_v1  ;;  %v5379_v5 = vld [vmem:[#allocation2] sm:$0xff]  ;;  %p4876_p4 = pnand %p4875_p2, %p5824_p3 }
  0x93   : > { %4076 = vmatprep.mubr.msk.f32.mxu0 %vm439_vm1, %v417_v8  ;;  %4089 = vmatmul.mubr.msk.f32.gmra.mrb[2].mxu1 %vm439_vm1, %v426_v10  ;;  %v5388_v6 = vld [vmem:[%s5793_s5] ss:$0 sm:$0xff]  ;;  %p4883_p13 = por %p4882_p11, %p4881_p8 }
  0x94   : > { %4091 = vmatprep.mubr.msk.f32.mxu1 %vm439_vm1, %v427_v12  ;;  %4480 = vmatpush3.bf16.msra.mxu1 %v4477_v22  ;;  %p4877_p7 = pneg %p4876_p4 }
  0x95   : > { %4482 = vmatprep.subr.bf16.mxu1 %v4481_v25 }
  0x96   : > { %4077 = vmatmul.mubr.msk.f32.gmra.mrb[4].mxu0 %vm439_vm1, %v418_v14  ;;  %p4884_p1 = pnand %p4883_p13, %p4877_p7 }
  0x97   : > { %4079 = vmatprep.mubr.msk.f32.mxu0 %vm439_vm1, %v419_v15  ;;  %4092 = vmatmul.mubr.msk.f32.gmra.mrb[4].mxu1 %vm439_vm1, %v428_v16 }
  0x9a   : > { %4080 = vmatmul.mubr.msk.f32.gmra.mrb[6].mxu0 %vm439_vm1, %v420_v17 }
  0x9b   : > { %4082 = vmatprep.mubr.msk.f32.mxu0 %vm439_vm1, %v421_v18 }
  0x9e   : > { %4083 = vmatmul.mubr.msk.f32.gmra.mrb[8].mxu0 %vm439_vm1, %v422_v19 }
  0x9f   : > { %4194 = vmatprep.mubr.msk.f32.mxu0 %vm1193_vm3, %v5379_v5 }
 0x161   : > { %v4072_v27 = vpop.f32.mrb[0].mxu0 }
 0x162   : > { %v558_v30 = vpop.f32.mrb[1].mxu0  ;;  %v4087_v32 = vpop.f32.mrb[0].mxu1  ;;  %v5245_v33 = vadd.f32 %v4072_v27, %v3612_v26 }
 0x163   : > { %v5243_v31 = vadd.f32 %v3612_v26, %v558_v30  ;;  %v608_v34 = vpop.f32.mrb[1].mxu1  ;;  %v5295_v61 = vadd.f32 %v4087_v32, %v3612_v26 }
 0x164   : > { %v5283_v58 = vadd.f32 %v3612_v26, %v608_v34 }
 0x165   : > { %v4075_v36 = vpop.f32.mrb[2].mxu0  ;;  %4102 = vmatprep.mubr.msk.f32.mxu1 %vm646_vm2, %v5243_v31 }
 0x166   : > { %v568_v39 = vpop.f32.mrb[3].mxu0  ;;  %4103 = vmatmul.mubr.msk.f32.vlgmr.msra.gmra.mrb[6].mxu1 %vm646_vm2, %v5245_v33  ;;  %v4090_v41 = vpop.f32.mrb[2].mxu1  ;;  %v5259_v42 = vadd.f32 %v4075_v36, %v3612_v26 }
 0x167   : > { %v5257_v40 = vadd.f32 %v3612_v26, %v568_v39  ;;  %4484 = vmatpush3.bf16.msra.mxu1 %v4481_v25  ;;  %v618_v43 = vpop.f32.mrb[3].mxu1  ;;  %v5303_v63 = vadd.f32 %v4090_v41, %v3612_v26 }
 0x168   : > { %4486 = vmatprep.subr.bf16.mxu1 %v4485_v35  ;;  %v5293_v60 = vadd.f32 %v3612_v26, %v618_v43 }
 0x169   : > { %v4078_v45 = vpop.f32.mrb[4].mxu0  ;;  %4105 = vmatprep.mubr.msk.f32.mxu1 %vm646_vm2, %v5257_v40 }
 0x16a   : > { %v578_v46 = vpop.f32.mrb[5].mxu0  ;;  %4106 = vmatmul.mubr.msk.f32.gmra.mrb[8].mxu1 %vm646_vm2, %v5259_v42  ;;  %v4093_v48 = vpop.f32.mrb[4].mxu1  ;;  %v5267_v49 = vadd.f32 %v4078_v45, %v3612_v26 }
 0x16b   : > { %v5265_v47 = vadd.f32 %v3612_v26, %v578_v46  ;;  %4488 = vmatpush3.bf16.msra.mxu1 %v4485_v35  ;;  %v628_v50 = vpop.f32.mrb[5].mxu1  ;;  %v5309_v0 = vadd.f32 %v4093_v48, %v3612_v26 }
 0x16c   : > { %4490 = vmatprep.subr.bf16.mxu1 %v4489_v44  ;;  %v5301_v62 = vadd.f32 %v3612_v26, %v628_v50 }
 0x16d   : > { %v4081_v51 = vpop.f32.mrb[6].mxu0  ;;  %4108 = vmatprep.mubr.msk.f32.mxu1 %vm646_vm2, %v5265_v47 }
 0x16e   : > { %v588_v52 = vpop.f32.mrb[7].mxu0  ;;  %4109 = vmatmul.mubr.msk.f32.gmra.mrb[10].mxu1 %vm646_vm2, %v5267_v49  ;;  %v5275_v54 = vadd.f32 %v4081_v51, %v3612_v26 }
 0x16f   : > { %v5273_v53 = vadd.f32 %v3612_v26, %v588_v52 }
 0x171   : > { %v4084_v55 = vpop.f32.mrb[8].mxu0  ;;  %4111 = vmatprep.mubr.msk.f32.mxu1 %vm646_vm2, %v5273_v53 }
 0x172   : > { %v598_v56 = vpop.f32.mrb[9].mxu0  ;;  %4112 = vmatmul.mubr.msk.f32.gmra.mrb[12].mxu1 %vm646_vm2, %v5275_v54  ;;  %v5285_v59 = vadd.f32 %v4084_v55, %v3612_v26 }
 0x173   : > { %v5281_v57 = vadd.f32 %v3612_v26, %v598_v56 }
 0x175   : > { %4114 = vmatprep.mubr.msk.f32.mxu1 %vm646_vm2, %v5281_v57 }
 0x176   : > { %4115 = vmatmul.mubr.msk.f32.gmra.mrb[14].mxu1 %vm646_vm2, %v5285_v59 }
 0x177   : > { %4117 = vmatprep.mubr.msk.f32.mxu1 %vm646_vm2, %v5283_v58 }
 0x17a   : > { %4118 = vmatmul.mubr.msk.f32.gmra.mrb[16].mxu1 %vm646_vm2, %v5295_v61 }
 0x17b   : > { %4120 = vmatprep.mubr.msk.f32.mxu1 %vm646_vm2, %v5293_v60 }
 0x17e   : > { %4121 = vmatmul.mubr.msk.f32.gmra.mrb[18].mxu1 %vm646_vm2, %v5303_v63 }
 0x17f   : > { %4123 = vmatprep.mubr.msk.f32.mxu1 %vm646_vm2, %v5301_v62 }
 0x182   : > { %4124 = vmatmul.mubr.msk.f32.gmra.mrb[20].mxu1 %vm646_vm2, %v5309_v0 }
 0x183   : > { %4134 = vmatprep.mubr.f32.mxu1 %v4958_v3 }
 0x186   : > { %4135 = vmatmul.mubr.f32.vlgmr.msra.gmra.mrb[6].mxu1 %v4958_v3 }
 0x187   : > { %4137 = vmatprep.mubr.msk.f32.mxu1 %vm646_vm2, %v5243_v31  ;;  %4492 = vmatpush3.bf16.msra.mxu1 %v4489_v44 }
 0x188   : > { %4494 = vmatprep.subr.bf16.mxu1 %v4493_v4 }
 0x18a   : > { %4138 = vmatmul.mubr.msk.f32.gmra.mrb[8].mxu1 %vm646_vm2, %v5245_v33 }
 0x18b   : > { %4140 = vmatprep.mubr.msk.f32.mxu1 %vm646_vm2, %v5257_v40  ;;  %4496 = vmatpush3.bf16.msra.mxu1 %v4493_v4 }
 0x18e   : > { %4141 = vmatmul.mubr.msk.f32.gmra.mrb[10].mxu1 %vm646_vm2, %v5259_v42 }
 0x18f   : > { %4143 = vmatprep.mubr.msk.f32.mxu1 %vm646_vm2, %v5265_v47 }
 0x192   : > { %4144 = vmatmul.mubr.msk.f32.gmra.mrb[12].mxu1 %vm646_vm2, %v5267_v49 }
 0x193   : > { %4146 = vmatprep.mubr.msk.f32.mxu1 %vm646_vm2, %v5273_v53 }
 0x196   : > { %4147 = vmatmul.mubr.msk.f32.gmra.mrb[14].mxu1 %vm646_vm2, %v5275_v54 }
 0x197   : > { %4149 = vmatprep.mubr.msk.f32.mxu1 %vm646_vm2, %v5281_v57 }
 0x19a   : > { %4150 = vmatmul.mubr.msk.f32.gmra.mrb[16].mxu1 %vm646_vm2, %v5285_v59 }
 0x19b   : > { %4152 = vmatprep.mubr.msk.f32.mxu1 %vm646_vm2, %v5283_v58 }
 0x19e   : > { %4153 = vmatmul.mubr.msk.f32.gmra.mrb[18].mxu1 %vm646_vm2, %v5295_v61 }
 0x19f   : > { %4155 = vmatprep.mubr.msk.f32.mxu1 %vm646_vm2, %v5293_v60 }
 0x1a2   : > { %4156 = vmatmul.mubr.msk.f32.gmra.mrb[20].mxu1 %vm646_vm2, %v5303_v63 }
 0x1a3   : > { %4166 = vmatprep.mubr.msk.f32.mxu1 %vm646_vm2, %v5257_v40 }
 0x1a6   : > { %4167 = vmatmul.mubr.msk.f32.vlgmr.msra.gmra.mrb[6].mxu1 %vm646_vm2, %v5259_v42 }
 0x1a7   : > { %4169 = vmatprep.mubr.msk.f32.mxu1 %vm646_vm2, %v5265_v47 }
 0x1aa   : > { %4170 = vmatmul.mubr.msk.f32.gmra.mrb[8].mxu1 %vm646_vm2, %v5267_v49 }
 0x1ab   : > { %4172 = vmatprep.mubr.msk.f32.mxu1 %vm646_vm2, %v5273_v53 }
 0x1ae   : > { %4173 = vmatmul.mubr.msk.f32.gmra.mrb[10].mxu1 %vm646_vm2, %v5275_v54 }
 0x1af   : > { %4175 = vmatprep.mubr.msk.f32.mxu1 %vm646_vm2, %v5281_v57 }
 0x1b2   : > { %4176 = vmatmul.mubr.msk.f32.gmra.mrb[12].mxu1 %vm646_vm2, %v5285_v59 }
 0x1b3   : > { %4178 = vmatprep.mubr.msk.f32.mxu1 %vm646_vm2, %v5283_v58 }
 0x1b6   : > { %4179 = vmatmul.mubr.msk.f32.gmra.mrb[14].mxu1 %vm646_vm2, %v5295_v61 }
 0x1b7   : > { %4181 = vmatprep.mubr.msk.f32.mxu1 %vm646_vm2, %v5293_v60 }
 0x1ba   : > { %4182 = vmatmul.mubr.msk.f32.gmra.mrb[16].mxu1 %vm646_vm2, %v5303_v63 }
 0x1bb   : > { %4184 = vmatprep.mubr.msk.f32.mxu1 %vm646_vm2, %v5301_v62 }
 0x1be   : > { %4185 = vmatmul.mubr.msk.f32.gmra.mrb[18].mxu1 %vm646_vm2, %v5309_v0 }
 0x1bf   : > { %4187 = vmatprep.mubr.f32.mxu1 %v4958_v3 }
 0x1c2   : > { %4188 = vmatmul.mubr.f32.gmra.mrb[20].mxu1 %v4958_v3 }
 0x1c3   : > { %4378 = vmatprep.mubr.msk.f32.mxu1 %vm1193_vm3, %v5379_v5 }
 0x279   : > { %v4168_v7 = vpop.f32.mrb[6].mxu1 }
 0x27a   : > { %v1162_v8 = vadd.f32 %v4168_v7, %v5388_v6  ;;  %v1059_v9 = vpop.f32.mrb[7].mxu1 }
 0x27b   : > { %v1161_v10 = vadd.f32 %v5388_v6, %v1059_v9 }
 0x27c   : > { %v1178_v11 = vmax.f32 %v1162_v8, 0.0 }
 0x27d   : > { %v1177_v12 = vmax.f32 %v1161_v10, 0.0  ;;  %v4171_v13 = vpop.f32.mrb[8].mxu1 }
 0x27e   : > { %v1164_v14 = vadd.f32 %v4171_v13, %v5388_v6  ;;  %v1069_v15 = vpop.f32.mrb[9].mxu1 }
 0x27f   : > { %v4497_v16 = vpack.c.bf16 %v1178_v11, %v1177_v12  ;;  %v1163_v17 = vadd.f32 %v5388_v6, %v1069_v15 }
 0x280   : > { %v1180_v18 = vmax.f32 %v1164_v14, 0.0 }
 0x281   : > { %v1179_v19 = vmax.f32 %v1163_v17, 0.0  ;;  %v4174_v20 = vpop.f32.mrb[10].mxu1  ;;  %4498 = vmatprep.subr.bf16.mxu0 %v4497_v16  ;;  %v1800_v17 = vld [vmem:[%s5794_s6] sm:$0xff] }
 0x282   : > { %v1166_v21 = vadd.f32 %v4174_v20, %v5388_v6  ;;  %v1079_v22 = vpop.f32.mrb[11].mxu1  ;;  %4500 = vmatpush3.bf16.msra.mxu0 %v4497_v16 }
 0x283   : > { %v4501_v24 = vpack.c.bf16 %v1180_v18, %v1179_v19  ;;  %v1165_v25 = vadd.f32 %v5388_v6, %v1079_v22  ;;  %v1801_v18 = vld [vmem:[%s5794_s6 + $0x8] sm:$0xff]  ;;  %v1803_v22 = vld [vmem:[%s5794_s6 + $0x18] sm:$0xff] }
 0x284   : > { %v1182_v26 = vmax.f32 %v1166_v21, 0.0  ;;  %v1802_v21 = vld [vmem:[%s5794_s6 + $0x10] sm:$0xff] }
 0x285   : > { %v1181_v27 = vmax.f32 %v1165_v25, 0.0  ;;  %v4177_v28 = vpop.f32.mrb[12].mxu1  ;;  %4195 = vmatmul.mubr.msk.f32.vlgmr.msra.gmra.mrb[10].mxu0 %vm1193_vm3, %v5395_v23  ;;  %4502 = vmatprep.subr.bf16.mxu0 %v4501_v24 }
 0x286   : > { %v1168_v29 = vadd.f32 %v4177_v28, %v5388_v6  ;;  %v1089_v30 = vpop.f32.mrb[13].mxu1  ;;  %4504 = vmatpush3.bf16.msra.mxu0 %v4501_v24  ;;  %4201 = vmatprep.mubr.msk.f32.mxu0 %vm1193_vm3, %v5379_v5  ;;  %v4533_v24 = vpack.c.bf16 %v1803_v22, %v1802_v21  ;;  %v3754_v21 = vld [vmem:[%s5792_s4 + $0xa0] sm:$0xff]  ;;  %v3755_v22 = vld [vmem:[%s5792_s4 + $0xa8] sm:$0xff] }
 0x287   : > { %v4505_v32 = vpack.c.bf16 %v1182_v26, %v1181_v27  ;;  %v1167_v34 = vadd.f32 %v5388_v6, %v1089_v30 }
 0x288   : > { %v1184_v35 = vmax.f32 %v1168_v29, 0.0 }
 0x289   : > { %v1183_v36 = vmax.f32 %v1167_v34, 0.0  ;;  %v4180_v37 = vpop.f32.mrb[14].mxu1  ;;  %4202 = vmatmul.mubr.msk.f32.vlgmr.msra.gmra.mrb[12].mxu0 %vm1193_vm3, %v5395_v23  ;;  %4506 = vmatprep.subr.bf16.mxu0 %v4505_v32 }
 0x28a   : > { %v1170_v38 = vadd.f32 %v4180_v37, %v5388_v6  ;;  %v1099_v39 = vpop.f32.mrb[15].mxu1  ;;  %4508 = vmatpush3.bf16.msra.mxu0 %v4505_v32  ;;  %4208 = vmatprep.mubr.msk.f32.mxu0 %vm1193_vm3, %v5379_v5 }
 0x28b   : > { %v4509_v41 = vpack.c.bf16 %v1184_v35, %v1183_v36  ;;  %v1169_v43 = vadd.f32 %v5388_v6, %v1099_v39 }
 0x28c   : > { %v1186_v44 = vmax.f32 %v1170_v38, 0.0 }
 0x28d   : > { %v1185_v45 = vmax.f32 %v1169_v43, 0.0  ;;  %v4183_v46 = vpop.f32.mrb[16].mxu1  ;;  %4209 = vmatmul.mubr.msk.f32.vlgmr.msra.gmra.mrb[14].mxu0 %vm1193_vm3, %v5395_v23  ;;  %4510 = vmatprep.subr.bf16.mxu0 %v4509_v41 }
 0x28e   : > { %v1172_v48 = vadd.f32 %v4183_v46, %v5388_v6  ;;  %v1109_v50 = vpop.f32.mrb[17].mxu1  ;;  %4512 = vmatpush3.bf16.msra.mxu0 %v4509_v41  ;;  %4215 = vmatprep.mubr.msk.f32.mxu0 %vm1193_vm3, %v5379_v5  ;;  %v3721_v46 = vld [vmem:[%s5792_s4 + $0x88] sm:$0xff] }
 0x28f   : > { %v4513_v51 = vpack.c.bf16 %v1186_v44, %v1185_v45  ;;  %v1171_v52 = vadd.f32 %v5388_v6, %v1109_v50  ;;  %v3720_v45 = vld [vmem:[%s5792_s4 + $0x80] sm:$0xff]  ;;  %v3722_v50 = vld [vmem:[%s5792_s4 + $0x90] sm:$0xff] }
 0x290   : > { %v1188_v55 = vmax.f32 %v1172_v48, 0.0  ;;  %v4537_v48 = vpack.c.bf16 %v3721_v46, %v3720_v45 }
 0x291   : > { %v1187_v56 = vmax.f32 %v1171_v52, 0.0  ;;  %v4186_v1 = vpop.f32.mrb[18].mxu1  ;;  %4216 = vmatmul.mubr.msk.f32.vlgmr.msra.gmra.mrb[16].mxu0 %vm1193_vm3, %v5395_v23  ;;  %4514 = vmatprep.subr.bf16.mxu0 %v4513_v51 }
 0x292   : > { %v1174_v2 = vadd.f32 %v4186_v1, %v5388_v6  ;;  %v1119_v4 = vpop.f32.mrb[19].mxu1  ;;  %4516 = vmatpush3.bf16.msra.mxu0 %v4513_v51  ;;  %4222 = vmatprep.mubr.msk.f32.mxu0 %vm1193_vm3, %v5379_v5  ;;  %v3723_v51 = vld [vmem:[%s5792_s4 + $0x98] sm:$0xff] }
 0x293   : > { %v4517_v7 = vpack.c.bf16 %v1188_v55, %v1187_v56  ;;  %v1173_v8 = vadd.f32 %v5388_v6, %v1119_v4  ;;  %v4541_v52 = vpack.c.bf16 %v3723_v51, %v3722_v50  ;;  %v3716_v55 = vld [vmem:[%s5792_s4 + $0x60] sm:$0xff]  ;;  %v3717_v56 = vld [vmem:[%s5792_s4 + $0x68] sm:$0xff] }
 0x294   : > { %v1190_v9 = vmax.f32 %v1174_v2, 0.0  ;;  %v4545_v1 = vpack.c.bf16 %v3717_v56, %v3716_v55  ;;  %v5484_v2 = vld [vmem:[#allocation8] ss:$0 sm:$0xff] }
 0x295   : > { %v1189_v10 = vmax.f32 %v1173_v8, 0.0  ;;  %v4189_v11 = vpop.f32.mrb[20].mxu1  ;;  %4223 = vmatmul.mubr.msk.f32.vlgmr.msra.gmra.mrb[18].mxu0 %vm1193_vm3, %v5395_v23  ;;  %4518 = vmatprep.subr.bf16.mxu0 %v4517_v7 }
 0x296   : > { %v1176_v12 = vadd.f32 %v4189_v11, %v5388_v6  ;;  %v1129_v13 = vpop.f32.mrb[21].mxu1  ;;  %4520 = vmatpush3.bf16.msra.mxu0 %v4517_v7  ;;  %4229 = vmatprep.mubr.msk.f32.mxu0 %vm1193_vm3, %v5379_v5 }
 0x297   : > { %v4521_v14 = vpack.c.bf16 %v1190_v9, %v1189_v10  ;;  %v1175_v15 = vadd.f32 %v5388_v6, %v1129_v13  ;;  %v4529_v6 = vpack.c.bf16 %v1801_v18, %v1800_v17  ;;  %v3718_v13 = vld [vmem:[%s5792_s4 + $0x70] sm:$0xff] }
 0x298   : > { %v1192_v16 = vmax.f32 %v1176_v12, 0.0 }
 0x299   : > { %v1191_v19 = vmax.f32 %v1175_v15, 0.0  ;;  %4230 = vmatmul.mubr.msk.f32.vlgmr.msra.gmra.mrb[20].mxu0 %vm1193_vm3, %v5395_v23  ;;  %4522 = vmatprep.subr.bf16.mxu0 %v4521_v14 }
 0x29a   : > { %4524 = vmatpush3.bf16.msra.mxu0 %v4521_v14  ;;  %4236 = vmatprep.mubr.msk.f32.mxu0 %vm1193_vm3, %v5379_v5  ;;  %v3719_v14 = vld [vmem:[%s5792_s4 + $0x78] sm:$0xff] }
 0x29b   : > { %v4525_v20 = vpack.c.bf16 %v1192_v16, %v1191_v19  ;;  %v4549_v19 = vpack.c.bf16 %v3719_v14, %v3718_v13 }
 0x29d   : > { %4237 = vmatmul.mubr.msk.f32.vlgmr.msra.gmra.mrb[22].mxu0 %vm1193_vm3, %v5395_v23  ;;  %4526 = vmatprep.subr.bf16.mxu0 %v4525_v20 }
 0x29e   : > { %4528 = vmatpush3.bf16.msra.mxu0 %v4525_v20  ;;  %4243 = vmatprep.mubr.msk.f32.mxu0 %vm1193_vm3, %v5379_v5 }
 0x29f   : > { %4530 = vmatprep.subr.bf16.mxu0 %v4529_v6 }
 0x2a1   : > { %4244 = vmatmul.mubr.msk.f32.vlgmr.msra.gmra.mrb[24].mxu0 %vm1193_vm3, %v5395_v23 }
 0x2a2   : > { %4532 = vmatpush3.bf16.msra.mxu0 %v4529_v6 }
 0x2a3   : > { %4534 = vmatprep.subr.bf16.mxu0 %v4533_v24 }
 0x2a6   : > { %4536 = vmatpush3.bf16.msra.mxu0 %v4533_v24 }
 0x2a7   : > { %4538 = vmatprep.subr.bf16.mxu0 %v4537_v48 }
 0x358   : > { %v4196_v25 = vpop.f32.mrb[10].mxu0 }
 0x359   : > { %v1266_v26 = vpop.f32.mrb[11].mxu0 }
 0x35a   : > { %4254 = vmatprep.mubr.msk.f32.mxu0 %vm646_vm2, %v1266_v26 }
 0x35b   : > { %4255 = vmatmul.mubr.msk.f32.vlgmr.msra.gmra.mrb[26].mxu0 %vm646_vm2, %v4196_v25 }
 0x35c   : > { %v4203_v27 = vpop.f32.mrb[12].mxu0  ;;  %4540 = vmatpush3.bf16.msra.mxu0 %v4537_v48 }
 0x35d   : > { %v1341_v28 = vpop.f32.mrb[13].mxu0  ;;  %4542 = vmatprep.subr.bf16.mxu0 %v4541_v52 }
 0x35e   : > { %4257 = vmatprep.mubr.msk.f32.mxu0 %vm646_vm2, %v1341_v28  ;;  %v5525_v28 = vpack.c.bf16 %v3755_v22, %v3754_v21 }
 0x35f   : > { %4258 = vmatmul.mubr.msk.f32.gmra.mrb[28].mxu0 %vm646_vm2, %v4203_v27 }
 0x360   : > { %v4210_v29 = vpop.f32.mrb[14].mxu0  ;;  %4544 = vmatpush3.bf16.msra.mxu0 %v4541_v52 }
 0x361   : > { %v1416_v30 = vpop.f32.mrb[15].mxu0  ;;  %4546 = vmatprep.subr.bf16.mxu0 %v4545_v1 }
 0x362   : > { %4260 = vmatprep.mubr.msk.f32.mxu0 %vm646_vm2, %v1416_v30 }
 0x363   : > { %4261 = vmatmul.mubr.msk.f32.gmra.mrb[30].mxu0 %vm646_vm2, %v4210_v29 }
 0x364   : > { %v4217_v32 = vpop.f32.mrb[16].mxu0 }
 0x365   : > { %v1491_v34 = vpop.f32.mrb[17].mxu0 }
 0x366   : > { %4263 = vmatprep.mubr.msk.f32.mxu0 %vm646_vm2, %v1491_v34 }
 0x367   : > { %4264 = vmatmul.mubr.msk.f32.gmra.mrb[32].mxu0 %vm646_vm2, %v4217_v32 }
 0x368   : > { %v4224_v35 = vpop.f32.mrb[18].mxu0 }
 0x369   : > { %v1566_v36 = vpop.f32.mrb[19].mxu0 }
 0x36a   : > { %4266 = vmatprep.mubr.msk.f32.mxu0 %vm646_vm2, %v1566_v36 }
 0x36b   : > { %4267 = vmatmul.mubr.msk.f32.gmra.mrb[34].mxu0 %vm646_vm2, %v4224_v35 }
 0x36c   : > { %v4231_v37 = vpop.f32.mrb[20].mxu0 }
 0x36d   : > { %v1641_v38 = vpop.f32.mrb[21].mxu0 }
 0x36e   : > { %4269 = vmatprep.mubr.msk.f32.mxu0 %vm646_vm2, %v1641_v38 }
 0x36f   : > { %4270 = vmatmul.mubr.msk.f32.gmra.mrb[36].mxu0 %vm646_vm2, %v4231_v37 }
 0x370   : > { %v4238_v39 = vpop.f32.mrb[22].mxu0 }
 0x371   : > { %v1716_v41 = vpop.f32.mrb[23].mxu0 }
 0x372   : > { %4272 = vmatprep.mubr.msk.f32.mxu0 %vm646_vm2, %v1716_v41 }
 0x373   : > { %4273 = vmatmul.mubr.msk.f32.gmra.mrb[38].mxu0 %vm646_vm2, %v4238_v39 }
 0x374   : > { %v4245_v43 = vpop.f32.mrb[24].mxu0 }
 0x375   : > { %v1791_v44 = vpop.f32.mrb[25].mxu0 }
 0x376   : > { %4275 = vmatprep.mubr.msk.f32.mxu0 %vm646_vm2, %v1791_v44 }
 0x377   : > { %4276 = vmatmul.mubr.msk.f32.gmra.mrb[40].mxu0 %vm646_vm2, %v4245_v43 }
 0x42e   : > { %v4256_v4 = vpop.f32.mrb[26].mxu0 }
 0x42f   : > { %v1931_v7 = vadd.f32 %v4256_v4, %v5484_v2  ;;  %v1925_v8 = vpop.f32.mrb[27].mxu0 }
 0x430   : > { %v1926_v9 = vadd.f32 %v5484_v2, %v1925_v8 }
 0x431   : > { %v5489_v10 = vadd.f32 %v1931_v7, %v5245_v33 }
 0x432   : > { %v5492_v11 = vadd.f32 %v1926_v9, %v5243_v31  ;;  %v4259_v12 = vpop.f32.mrb[28].mxu0 }
 0x433   : > { %v1941_v15 = vadd.f32 %v4259_v12, %v5484_v2  ;;  %v1935_v16 = vpop.f32.mrb[29].mxu0  ;;  %v2021_v18 = vmax.f32 %v5489_v10, 0.0  ;;  %v5643_v10 = vld [vmem:[%s5793_s5 + $0x1] ss:$0 sm:$0xff] }
 0x434   : > { %v2020_v17 = vmax.f32 %v5492_v11, 0.0  ;;  %v1936_v33 = vadd.f32 %v5484_v2, %v1935_v16 }
 0x435   : > { %v2007_v31 = vadd.f32 %v1941_v15, %v5259_v42 }
 0x436   : > { %v2006_v20 = vadd.f32 %v1936_v33, %v5257_v40  ;;  %v4262_v6 = vpop.f32.mrb[30].mxu0  ;;  %4286 = vmatprep.mubr.msk.f32.mxu0 %vm646_vm2, %v2020_v17 }
 0x437   : > { %v1951_v24 = vadd.f32 %v4262_v6, %v5484_v2  ;;  %v1945_v25 = vpop.f32.mrb[31].mxu0  ;;  %4287 = vmatmul.mubr.msk.f32.vlgmr.msra.gmra.mrb[42].mxu0 %vm646_vm2, %v2021_v18  ;;  %v5522_v26 = vmax.f32 %v2007_v31, 0.0 }
 0x438   : > { %v5519_v40 = vmax.f32 %v2006_v20, 0.0  ;;  %v1946_v42 = vadd.f32 %v5484_v2, %v1945_v25  ;;  %4548 = vmatpush3.bf16.msra.mxu0 %v4545_v1 }
 0x439   : > { %v2009_v27 = vadd.f32 %v1951_v24, %v5267_v49  ;;  %4550 = vmatprep.subr.bf16.mxu0 %v4549_v19 }
 0x43a   : > { %v2008_v29 = vadd.f32 %v1946_v42, %v5265_v47  ;;  %v4265_v30 = vpop.f32.mrb[32].mxu0  ;;  %4289 = vmatprep.mubr.msk.f32.mxu0 %vm646_vm2, %v5519_v40 }
 0x43b   : > { %v1961_v32 = vadd.f32 %v4265_v30, %v5484_v2  ;;  %v1955_v34 = vpop.f32.mrb[33].mxu0  ;;  %4290 = vmatmul.mubr.msk.f32.gmra.mrb[44].mxu0 %vm646_vm2, %v5522_v26  ;;  %v5536_v49 = vmax.f32 %v2009_v27, 0.0 }
 0x43c   : > { %v5533_v35 = vmax.f32 %v2008_v29, 0.0  ;;  %v1956_v36 = vadd.f32 %v5484_v2, %v1955_v34  ;;  %4552 = vmatpush3.bf16.msra.mxu0 %v4549_v19 }
 0x43d   : > { %v2011_v37 = vadd.f32 %v1961_v32, %v5275_v54  ;;  %4554 = vmatprep.subr.bf16.mxu0 %v5525_v28 }
 0x43e   : > { %v2010_v47 = vadd.f32 %v1956_v36, %v5273_v53  ;;  %v4268_v38 = vpop.f32.mrb[34].mxu0  ;;  %4292 = vmatprep.mubr.msk.f32.mxu0 %vm646_vm2, %v5533_v35 }
 0x43f   : > { %v1971_v39 = vadd.f32 %v4268_v38, %v5484_v2  ;;  %v1965_v41 = vpop.f32.mrb[35].mxu0  ;;  %4293 = vmatmul.mubr.msk.f32.gmra.mrb[46].mxu0 %vm646_vm2, %v5536_v49  ;;  %v5549_v45 = vmax.f32 %v2011_v37, 0.0 }
 0x440   : > { %v5546_v43 = vmax.f32 %v2010_v47, 0.0  ;;  %v1966_v44 = vadd.f32 %v5484_v2, %v1965_v41 }
 0x441   : > { %v2013_v54 = vadd.f32 %v1971_v39, %v5285_v59 }
 0x442   : > { %v2012_v53 = vadd.f32 %v1966_v44, %v5281_v57  ;;  %v4271_v46 = vpop.f32.mrb[36].mxu0  ;;  %4295 = vmatprep.mubr.msk.f32.mxu0 %vm646_vm2, %v5546_v43 }
 0x443   : > { %v1981_v48 = vadd.f32 %v4271_v46, %v5484_v2  ;;  %v1975_v50 = vpop.f32.mrb[37].mxu0  ;;  %4296 = vmatmul.mubr.msk.f32.gmra.mrb[48].mxu0 %vm646_vm2, %v5549_v45  ;;  %v2029_v55 = vmax.f32 %v2013_v54, 0.0 }
 0x444   : > { %v2028_v51 = vmax.f32 %v2012_v53, 0.0  ;;  %v1976_v52 = vadd.f32 %v5484_v2, %v1975_v50 }
 0x445   : > { %v2015_v56 = vadd.f32 %v1981_v48, %v5295_v61 }
 0x446   : > { %v2014_v59 = vadd.f32 %v1976_v52, %v5283_v58  ;;  %v4274_v1 = vpop.f32.mrb[38].mxu0  ;;  %4298 = vmatprep.mubr.msk.f32.mxu0 %vm646_vm2, %v2028_v51 }
 0x447   : > { %v1991_v57 = vadd.f32 %v4274_v1, %v5484_v2  ;;  %v1985_v4 = vpop.f32.mrb[39].mxu0  ;;  %4299 = vmatmul.mubr.msk.f32.gmra.mrb[50].mxu0 %vm646_vm2, %v2029_v55  ;;  %v2031_v9 = vmax.f32 %v2015_v56, 0.0 }
 0x448   : > { %v2030_v7 = vmax.f32 %v2014_v59, 0.0  ;;  %v1986_v8 = vadd.f32 %v5484_v2, %v1985_v4 }
 0x449   : > { %v2017_v12 = vadd.f32 %v1991_v57, %v5303_v63 }
 0x44a   : > { %v2016_v13 = vadd.f32 %v1986_v8, %v5293_v60  ;;  %v4277_v14 = vpop.f32.mrb[40].mxu0  ;;  %4301 = vmatprep.mubr.msk.f32.mxu0 %vm646_vm2, %v2030_v7 }
 0x44b   : > { %v2001_v58 = vadd.f32 %v4277_v14, %v5484_v2  ;;  %v1995_v61 = vpop.f32.mrb[41].mxu0  ;;  %4302 = vmatmul.mubr.msk.f32.gmra.mrb[52].mxu0 %vm646_vm2, %v2031_v9  ;;  %v2033_v33 = vmax.f32 %v2017_v12, 0.0 }
 0x44c   : > { %v2032_v15 = vmax.f32 %v2016_v13, 0.0  ;;  %v1996_v16 = vadd.f32 %v5484_v2, %v1995_v61  ;;  %v3756_v2 = vld [vmem:[%s5792_s4 + $0xb0] sm:$0xff] }
 0x44d   : > { %v2019_v31 = vadd.f32 %v2001_v58, %v5309_v0  ;;  %v3757_v0 = vld [vmem:[%s5792_s4 + $0xb8] sm:$0xff] }
 0x44e   : > { %v2018_v19 = vadd.f32 %v1996_v16, %v5301_v62  ;;  %4304 = vmatprep.mubr.msk.f32.mxu0 %vm646_vm2, %v2032_v15  ;;  %v4557_v62 = vpack.c.bf16 %v3757_v0, %v3756_v2 }
 0x44f   : > { %4305 = vmatmul.mubr.msk.f32.gmra.mrb[54].mxu0 %vm646_vm2, %v2033_v33  ;;  %v5577_v63 = vmax.f32 %v2019_v31, 0.0  ;;  %v3790_v31 = vld [vmem:[%s5794_s6 + $0x20] sm:$0xff] }
 0x450   : > { %v5575_v60 = vmax.f32 %v2018_v19, 0.0  ;;  %v3791_v19 = vld [vmem:[%s5794_s6 + $0x28] sm:$0xff] }
 0x452   : > { %4307 = vmatprep.mubr.msk.f32.mxu0 %vm646_vm2, %v5575_v60 }
 0x453   : > { %4308 = vmatmul.mubr.msk.f32.gmra.mrb[56].mxu0 %vm646_vm2, %v5577_v63 }
 0x454   : > { %4318 = vmatprep.mubr.f32.mxu0 %v4958_v3 }
 0x457   : > { %4319 = vmatmul.mubr.f32.vlgmr.msra.gmra.mrb[42].mxu0 %v4958_v3 }
 0x458   : > { %4321 = vmatprep.mubr.msk.f32.mxu0 %vm646_vm2, %v2020_v17  ;;  %4556 = vmatpush3.bf16.msra.mxu0 %v5525_v28 }
 0x459   : > { %4558 = vmatprep.subr.bf16.mxu0 %v4557_v62 }
 0x45b   : > { %4322 = vmatmul.mubr.msk.f32.gmra.mrb[44].mxu0 %vm646_vm2, %v2021_v18 }
 0x45c   : > { %4324 = vmatprep.mubr.msk.f32.mxu0 %vm646_vm2, %v5519_v40  ;;  %4560 = vmatpush3.bf16.msra.mxu0 %v4557_v62  ;;  %v4593_v62 = vpack.c.bf16 %v3791_v19, %v3790_v31 }
 0x45f   : > { %4325 = vmatmul.mubr.msk.f32.gmra.mrb[46].mxu0 %vm646_vm2, %v5522_v26 }
 0x460   : > { %4327 = vmatprep.mubr.msk.f32.mxu0 %vm646_vm2, %v5533_v35 }
 0x463   : > { %4328 = vmatmul.mubr.msk.f32.gmra.mrb[48].mxu0 %vm646_vm2, %v5536_v49 }
 0x464   : > { %4330 = vmatprep.mubr.msk.f32.mxu0 %vm646_vm2, %v5546_v43 }
 0x467   : > { %4331 = vmatmul.mubr.msk.f32.gmra.mrb[50].mxu0 %vm646_vm2, %v5549_v45 }
 0x468   : > { %4333 = vmatprep.mubr.msk.f32.mxu0 %vm646_vm2, %v2028_v51 }
 0x46b   : > { %4334 = vmatmul.mubr.msk.f32.gmra.mrb[52].mxu0 %vm646_vm2, %v2029_v55 }
 0x46c   : > { %4336 = vmatprep.mubr.msk.f32.mxu0 %vm646_vm2, %v2030_v7 }
 0x46f   : > { %4337 = vmatmul.mubr.msk.f32.gmra.mrb[54].mxu0 %vm646_vm2, %v2031_v9 }
 0x470   : > { %4339 = vmatprep.mubr.msk.f32.mxu0 %vm646_vm2, %v2032_v15 }
 0x473   : > { %4340 = vmatmul.mubr.msk.f32.gmra.mrb[56].mxu0 %vm646_vm2, %v2033_v33 }
 0x474   : > { %4350 = vmatprep.mubr.msk.f32.mxu0 %vm646_vm2, %v5519_v40 }
 0x477   : > { %4351 = vmatmul.mubr.msk.f32.vlgmr.msra.gmra.mrb[42].mxu0 %vm646_vm2, %v5522_v26 }
 0x478   : > { %4353 = vmatprep.mubr.msk.f32.mxu0 %vm646_vm2, %v5533_v35 }
 0x47b   : > { %4354 = vmatmul.mubr.msk.f32.gmra.mrb[44].mxu0 %vm646_vm2, %v5536_v49 }
 0x47c   : > { %4356 = vmatprep.mubr.msk.f32.mxu0 %vm646_vm2, %v5546_v43 }
 0x47f   : > { %4357 = vmatmul.mubr.msk.f32.gmra.mrb[46].mxu0 %vm646_vm2, %v5549_v45 }
 0x480   : > { %4359 = vmatprep.mubr.msk.f32.mxu0 %vm646_vm2, %v2028_v51 }
 0x483   : > { %4360 = vmatmul.mubr.msk.f32.gmra.mrb[48].mxu0 %vm646_vm2, %v2029_v55 }
 0x484   : > { %4362 = vmatprep.mubr.msk.f32.mxu0 %vm646_vm2, %v2030_v7 }
 0x487   : > { %4363 = vmatmul.mubr.msk.f32.gmra.mrb[50].mxu0 %vm646_vm2, %v2031_v9 }
 0x488   : > { %4365 = vmatprep.mubr.msk.f32.mxu0 %vm646_vm2, %v2032_v15 }
 0x48b   : > { %4366 = vmatmul.mubr.msk.f32.gmra.mrb[52].mxu0 %vm646_vm2, %v2033_v33 }
 0x48c   : > { %4368 = vmatprep.mubr.msk.f32.mxu0 %vm646_vm2, %v5575_v60 }
 0x48f   : > { %4369 = vmatmul.mubr.msk.f32.gmra.mrb[54].mxu0 %vm646_vm2, %v5577_v63 }
 0x490   : > { %4371 = vmatprep.mubr.f32.mxu0 %v4958_v3 }
 0x493   : > { %4372 = vmatmul.mubr.f32.gmra.mrb[56].mxu0 %v4958_v3 }
 0x54a   : > { %v4352_v11 = vpop.f32.mrb[42].mxu0 }
 0x54b   : > { %v2559_v17 = vadd.f32 %v4352_v11, %v5643_v10  ;;  %v2455_v18 = vpop.f32.mrb[43].mxu0  ;;  %v3793_v11 = vld [vmem:[%s5794_s6 + $0x38] sm:$0xff] }
 0x54c   : > { %v2558_v20 = vadd.f32 %v5643_v10, %v2455_v18 }
 0x54d   : > { %v2575_v6 = vmax.f32 %v2559_v17, 0.0 }
 0x54e   : > { %v2574_v21 = vmax.f32 %v2558_v20, 0.0  ;;  %v4355_v22 = vpop.f32.mrb[44].mxu0 }
 0x54f   : > { %v2561_v24 = vadd.f32 %v4355_v22, %v5643_v10  ;;  %v2465_v25 = vpop.f32.mrb[45].mxu0 }
 0x550   : > { %v4561_v40 = vpack.c.bf16 %v2575_v6, %v2574_v21  ;;  %v2560_v3 = vadd.f32 %v5643_v10, %v2465_v25 }
 0x551   : > { %v2577_v42 = vmax.f32 %v2561_v24, 0.0 }
 0x552   : > { %v2576_v26 = vmax.f32 %v2560_v3, 0.0  ;;  %v4358_v27 = vpop.f32.mrb[46].mxu0  ;;  %4562 = vmatprep.subr.bf16.mxu1 %v4561_v40 }
 0x553   : > { %v2563_v28 = vadd.f32 %v4358_v27, %v5643_v10  ;;  %v2475_v29 = vpop.f32.mrb[47].mxu0  ;;  %4564 = vmatpush3.bf16.msra.mxu1 %v4561_v40 }
 0x554   : > { %v4565_v30 = vpack.c.bf16 %v2577_v42, %v2576_v26  ;;  %v2562_v32 = vadd.f32 %v5643_v10, %v2475_v29 }
 0x555   : > { %v2579_v34 = vmax.f32 %v2563_v28, 0.0 }
 0x556   : > { %v2578_v35 = vmax.f32 %v2562_v32, 0.0  ;;  %v4361_v36 = vpop.f32.mrb[48].mxu0  ;;  %4379 = vmatmul.mubr.msk.f32.vlgmr.msra.gmra.mrb[22].mxu1 %vm1193_vm3, %v5395_v23  ;;  %4566 = vmatprep.subr.bf16.mxu1 %v4565_v30  ;;  %v3387_v32 = vld [vmem:[%s5796_s8 + $0x8] sm:$0xff] }
 0x557   : > { %v2565_v49 = vadd.f32 %v4361_v36, %v5643_v10  ;;  %v2485_v37 = vpop.f32.mrb[49].mxu0  ;;  %4568 = vmatpush3.bf16.msra.mxu1 %v4565_v30  ;;  %4385 = vmatprep.mubr.msk.f32.mxu1 %vm1193_vm3, %v5379_v5  ;;  %v3386_v30 = vld [vmem:[%s5796_s8] sm:$0xff]  ;;  %v3389_v36 = vld [vmem:[%s5796_s8 + $0x18] sm:$0xff] }
 0x558   : > { %v4569_v47 = vpack.c.bf16 %v2579_v34, %v2578_v35  ;;  %v2564_v38 = vadd.f32 %v5643_v10, %v2485_v37  ;;  %v4601_v34 = vpack.c.bf16 %v3387_v32, %v3386_v30  ;;  %v3388_v35 = vld [vmem:[%s5796_s8 + $0x10] sm:$0xff] }
 0x559   : > { %v2581_v39 = vmax.f32 %v2565_v49, 0.0  ;;  %v4605_v49 = vpack.c.bf16 %v3389_v36, %v3388_v35 }
 0x55a   : > { %v2580_v41 = vmax.f32 %v2564_v38, 0.0  ;;  %v4364_v43 = vpop.f32.mrb[50].mxu0  ;;  %4386 = vmatmul.mubr.msk.f32.vlgmr.msra.gmra.mrb[24].mxu1 %vm1193_vm3, %v5395_v23  ;;  %4570 = vmatprep.subr.bf16.mxu1 %v4569_v47 }
 0x55b   : > { %v2567_v44 = vadd.f32 %v4364_v43, %v5643_v10  ;;  %v2495_v45 = vpop.f32.mrb[51].mxu0  ;;  %4572 = vmatpush3.bf16.msra.mxu1 %v4569_v47  ;;  %4392 = vmatprep.mubr.msk.f32.mxu1 %vm1193_vm3, %v5379_v5 }
 0x55c   : > { %v4573_v54 = vpack.c.bf16 %v2581_v39, %v2580_v41  ;;  %v2566_v53 = vadd.f32 %v5643_v10, %v2495_v45 }
 0x55d   : > { %v2583_v46 = vmax.f32 %v2567_v44, 0.0 }
 0x55e   : > { %v2582_v48 = vmax.f32 %v2566_v53, 0.0  ;;  %v4367_v50 = vpop.f32.mrb[52].mxu0  ;;  %4393 = vmatmul.mubr.msk.f32.vlgmr.msra.gmra.mrb[26].mxu1 %vm1193_vm3, %v5395_v23  ;;  %4574 = vmatprep.subr.bf16.mxu1 %v4573_v54 }
 0x55f   : > { %v2569_v51 = vadd.f32 %v4367_v50, %v5643_v10  ;;  %v2505_v52 = vpop.f32.mrb[53].mxu0  ;;  %4576 = vmatpush3.bf16.msra.mxu1 %v4573_v54  ;;  %4399 = vmatprep.mubr.msk.f32.mxu1 %vm1193_vm3, %v5379_v5 }
 0x560   : > { %v4577_v55 = vpack.c.bf16 %v2583_v46, %v2582_v48  ;;  %v2568_v56 = vadd.f32 %v5643_v10, %v2505_v52  ;;  %v3794_v52 = vld [vmem:[#allocation8 + $0x1] ss:$0 sm:$0xff] }
 0x561   : > { %v2585_v59 = vmax.f32 %v2569_v51, 0.0 }
 0x562   : > { %v2584_v1 = vmax.f32 %v2568_v56, 0.0  ;;  %v4370_v57 = vpop.f32.mrb[54].mxu0  ;;  %4400 = vmatmul.mubr.msk.f32.vlgmr.msra.gmra.mrb[28].mxu1 %vm1193_vm3, %v5395_v23  ;;  %4578 = vmatprep.subr.bf16.mxu1 %v4577_v55 }
 0x563   : > { %v2571_v4 = vadd.f32 %v4370_v57, %v5643_v10  ;;  %v2515_v7 = vpop.f32.mrb[55].mxu0  ;;  %4580 = vmatpush3.bf16.msra.mxu1 %v4577_v55  ;;  %4406 = vmatprep.mubr.msk.f32.mxu1 %vm1193_vm3, %v5379_v5 }
 0x564   : > { %v4581_v8 = vpack.c.bf16 %v2585_v59, %v2584_v1  ;;  %v2570_v9 = vadd.f32 %v5643_v10, %v2515_v7 }
 0x565   : > { %v2587_v12 = vmax.f32 %v2571_v4, 0.0 }
 0x566   : > { %v2586_v13 = vmax.f32 %v2570_v9, 0.0  ;;  %v4373_v14 = vpop.f32.mrb[56].mxu0  ;;  %4407 = vmatmul.mubr.msk.f32.vlgmr.msra.gmra.mrb[30].mxu1 %vm1193_vm3, %v5395_v23  ;;  %4582 = vmatprep.subr.bf16.mxu1 %v4581_v8  ;;  %v3811_v9 = vld [vmem:[%s5797_s9] ss:$0 sm:$0xff] }
 0x567   : > { %v2573_v58 = vadd.f32 %v4373_v14, %v5643_v10  ;;  %v2525_v61 = vpop.f32.mrb[57].mxu0  ;;  %4584 = vmatpush3.bf16.msra.mxu1 %v4581_v8  ;;  %4413 = vmatprep.mubr.msk.f32.mxu1 %vm1193_vm3, %v5379_v5 }
 0x568   : > { %v4585_v15 = vpack.c.bf16 %v2587_v12, %v2586_v13  ;;  %v2572_v16 = vadd.f32 %v5643_v10, %v2525_v61  ;;  %v3792_v10 = vld [vmem:[%s5794_s6 + $0x30] sm:$0xff] }
 0x569   : > { %v2589_v33 = vmax.f32 %v2573_v58, 0.0  ;;  %v4597_v17 = vpack.c.bf16 %v3793_v11, %v3792_v10 }
 0x56a   : > { %v2588_v2 = vmax.f32 %v2572_v16, 0.0  ;;  %4414 = vmatmul.mubr.msk.f32.vlgmr.msra.gmra.mrb[32].mxu1 %vm1193_vm3, %v5395_v23  ;;  %4586 = vmatprep.subr.bf16.mxu1 %v4585_v15 }
 0x56b   : > { %4588 = vmatpush3.bf16.msra.mxu1 %v4585_v15  ;;  %4420 = vmatprep.mubr.msk.f32.mxu1 %vm1193_vm3, %v5379_v5 }
 0x56c   : > { %v4589_v0 = vpack.c.bf16 %v2589_v33, %v2588_v2 }
 0x56e   : > { %4421 = vmatmul.mubr.msk.f32.vlgmr.msra.gmra.mrb[34].mxu1 %vm1193_vm3, %v5395_v23  ;;  %4590 = vmatprep.subr.bf16.mxu1 %v4589_v0 }
 0x56f   : > { %4592 = vmatpush3.bf16.msra.mxu1 %v4589_v0  ;;  %4427 = vmatprep.mubr.msk.f32.mxu1 %vm1193_vm3, %v5379_v5 }
 0x570   : > { %4594 = vmatprep.subr.bf16.mxu1 %v4593_v62 }
 0x572   : > { %4428 = vmatmul.mubr.msk.f32.vlgmr.msra.gmra.mrb[36].mxu1 %vm1193_vm3, %v5395_v23 }
 0x573   : > { %4596 = vmatpush3.bf16.msra.mxu1 %v4593_v62 }
 0x574   : > { %4598 = vmatprep.subr.bf16.mxu1 %v4597_v17 }
 0x577   : > { %4600 = vmatpush3.bf16.msra.mxu1 %v4597_v17 }
 0x578   : > { %4602 = vmatprep.subr.bf16.mxu1 %v4601_v34 }
 0x629   : > { %v4380_v18 = vpop.f32.mrb[22].mxu1 }
 0x62a   : > { %v2656_v20 = vpop.f32.mrb[23].mxu1 }
 0x62b   : > { %4438 = vmatprep.mubr.msk.f32.mxu1 %vm646_vm2, %v2656_v20 }
 0x62c   : > { %4439 = vmatmul.mubr.msk.f32.vlgmr.msra.gmra.mrb[38].mxu1 %vm646_vm2, %v4380_v18 }
 0x62d   : > { %v4387_v6 = vpop.f32.mrb[24].mxu1  ;;  %4604 = vmatpush3.bf16.msra.mxu1 %v4601_v34 }
 0x62e   : > { %v2731_v21 = vpop.f32.mrb[25].mxu1  ;;  %4606 = vmatprep.subr.bf16.mxu1 %v4605_v49 }
 0x62f   : > { %4441 = vmatprep.mubr.msk.f32.mxu1 %vm646_vm2, %v2731_v21 }
 0x630   : > { %4442 = vmatmul.mubr.msk.f32.gmra.mrb[40].mxu1 %vm646_vm2, %v4387_v6 }
 0x631   : > { %v4394_v5 = vpop.f32.mrb[26].mxu1  ;;  %4608 = vmatpush3.bf16.msra.mxu1 %v4605_v49 }
 0x632   : > { %v2806_v22 = vpop.f32.mrb[27].mxu1 }
 0x633   : > { %4444 = vmatprep.mubr.msk.f32.mxu1 %vm646_vm2, %v2806_v22 }
 0x634   : > { %4445 = vmatmul.mubr.msk.f32.gmra.mrb[42].mxu1 %vm646_vm2, %v4394_v5 }
 0x635   : > { %v4401_v23 = vpop.f32.mrb[28].mxu1 }
 0x636   : > { %v2881_v24 = vpop.f32.mrb[29].mxu1 }
 0x637   : > { %4447 = vmatprep.mubr.msk.f32.mxu1 %vm646_vm2, %v2881_v24 }
 0x638   : > { %4448 = vmatmul.mubr.msk.f32.gmra.mrb[44].mxu1 %vm646_vm2, %v4401_v23 }
 0x639   : > { %v4408_v25 = vpop.f32.mrb[30].mxu1 }
 0x63a   : > { %v2956_v40 = vpop.f32.mrb[31].mxu1 }
 0x63b   : > { %4450 = vmatprep.mubr.msk.f32.mxu1 %vm646_vm2, %v2956_v40 }
 0x63c   : > { %4451 = vmatmul.mubr.msk.f32.gmra.mrb[46].mxu1 %vm646_vm2, %v4408_v25 }
 0x63d   : > { %v4415_v3 = vpop.f32.mrb[32].mxu1 }
 0x63e   : > { %v3031_v42 = vpop.f32.mrb[33].mxu1 }
 0x63f   : > { %4453 = vmatprep.mubr.msk.f32.mxu1 %vm646_vm2, %v3031_v42 }
 0x640   : > { %4454 = vmatmul.mubr.msk.f32.gmra.mrb[48].mxu1 %vm646_vm2, %v4415_v3 }
 0x641   : > { %v4422_v26 = vpop.f32.mrb[34].mxu1 }
 0x642   : > { %v3106_v27 = vpop.f32.mrb[35].mxu1 }
 0x643   : > { %4456 = vmatprep.mubr.msk.f32.mxu1 %vm646_vm2, %v3106_v27 }
 0x644   : > { %4457 = vmatmul.mubr.msk.f32.gmra.mrb[50].mxu1 %vm646_vm2, %v4422_v26 }
 0x645   : > { %v4429_v28 = vpop.f32.mrb[36].mxu1 }
 0x646   : > { %v3181_v29 = vpop.f32.mrb[37].mxu1 }
 0x647   : > { %4459 = vmatprep.mubr.msk.f32.mxu1 %vm646_vm2, %v3181_v29 }
 0x648   : > { %4460 = vmatmul.mubr.msk.f32.gmra.mrb[52].mxu1 %vm646_vm2, %v4429_v28 }
 0x6ff   : > { %v4440_v37 = vpop.f32.mrb[38].mxu1 }
 0x700   : > { %v3317_v47 = vpop.f32.mrb[39].mxu1 }
 0x703   : > { %v4443_v38 = vpop.f32.mrb[40].mxu1 }
 0x704   : > { %v3325_v39 = vpop.f32.mrb[41].mxu1 }
 0x707   : > { %v4446_v41 = vpop.f32.mrb[42].mxu1 }
 0x708   : > { %v3333_v43 = vpop.f32.mrb[43].mxu1 }
 0x70b   : > { %v4449_v44 = vpop.f32.mrb[44].mxu1 }
 0x70c   : > { %v3341_v45 = vpop.f32.mrb[45].mxu1 }
 0x70f   : > { %v4452_v54 = vpop.f32.mrb[46].mxu1 }
 0x710   : > { %v3349_v53 = vpop.f32.mrb[47].mxu1 }
 0x713   : > { %v4455_v46 = vpop.f32.mrb[48].mxu1 }
 0x714   : > { %v3357_v48 = vpop.f32.mrb[49].mxu1 }
 0x717   : > { %v4458_v50 = vpop.f32.mrb[50].mxu1 }
 0x718   : > { %v3365_v51 = vpop.f32.mrb[51].mxu1 }
 0x71b   : > { %v4461_v55 = vpop.f32.mrb[52].mxu1 }
 0x71c   : > { %v3379_v56 = vadd.f32 %v4461_v55, %v3794_v52  ;;  %v3373_v59 = vpop.f32.mrb[53].mxu1 }
 0x71d   : > { %v3374_v1 = vadd.f32 %v3794_v52, %v3373_v59 }
 0x71e   : > { %v3383_v57 = vadd.f32 %v3379_v56, %v5577_v63 }
 0x71f   : > { %v3382_v4 = vadd.f32 %v3374_v1, %v5575_v60 }
 0x720   : > { %v3385_v8 = vmax.f32 %v3383_v57, 0.0 }
 0x721   : > { %v3384_v7 = vmax.f32 %v3382_v4, 0.0 }
 0x723   : > { %4470 = vmatprep.mubr.msk.f32.mxu1 %vm646_vm2, %v3384_v7 }
 0x724   : > { %4471 = vmatmul.mubr.msk.f32.vlgmr.msra.gmra.mrb[54].mxu1 %vm646_vm2, %v3385_v8 }
 0x7f7   : > { %v4472_v12 = vpop.f32.mrb[54].mxu1 }
 0x7f8   : > { %v3475_v63 = vadd.f32 %v4472_v12, %v3811_v9  ;;  %v3469_v60 = vpop.f32.mrb[55].mxu1 }
 0x7f9   : > { %v3470_v13 = vadd.f32 %v3811_v9, %v3469_v60 }
 0x7fa   : > { %3479 = vst [vmem:[%s407_s21 + $0x8] sm:$0xff] %v3475_v63 }
 0x7fb   : > { %3478 = vst [vmem:[%s407_s21] sm:$0xff] %v3470_v13 }
 0x7fc   : > { %4887 = shalt.err (!%p4884_p1)
}
 0x7fd   : > { %s4888_s2 = scalar_lea.hbm %s5745_s22, 256  ;;  %s4892_s28 = scalar_lea.hbm %s5798_s10, 512 }
 0x7fe   : > { %p4889_p0 = scmp.ne.s32.totalorder %s5745_s22, %s4888_s2  ;;  %p4893_p9 = scmp.lt.u32.totalorder %s5745_s22, %s5798_s10 }
 0x7ff   : > { %p4894_p12 = scmp.lt.u32.totalorder %s4892_s28, %s4888_s2  ;;  %p4896_p2 = scmp.lt.u32.totalorder %s4888_s2, %s5745_s22 }
 0x800   : > { %p4890_p6 = pnand %p4889_p0, %p5824_p3 }
 0x801   : > { %p4895_p10 = por %p4894_p12, %p4893_p9 }
 0x802   : > { %p4891_p5 = pneg %p4890_p6 }
 0x803   : > { %p4897_p4 = por %p4896_p2, %p4895_p10 }
 0x805   : > { %p4898_p7 = pnand %p4897_p4, %p4891_p5 }
 0x807   : > { %4901 = shalt.err (!%p4898_p7)
}
 0x808   : > { %s4960_s21 = smov 128   ;;  %s4961_s11 = smov 8  }
 0x809   : > { %4691 = dma.vmem_to_hbm [thread:$0]  (%p5824_p3), %s5740_s26, 256, %s5745_s22, %s5747_s12, %s4960_s21, %s4960_s21, %s4961_s11  }
 0x80a PF: > { %s5825_s18 = sld [smem:[#allocation18_spill]]  ;;  %p4718_p8 = scmp.ge.s32.totalorder %s4948_s16, 2 }
 0x80b   : > { %s3509_s27 = sand.u32 1, %s4936_s13  }
 0x80c   : > { %s3510_s29 = scalar_lea.sflag [#allocation4], %s3509_s27 }
 0x810   : > { %p5826_p11 = scmp.ne.s32.totalorder %s5825_s18, 0 }
 0x812   : > { %p4707_p13 = pnand %p4718_p8, %p5826_p11 }
 0x814   : > { %4931 = dma.done.wait (!%p4707_p13), %s3510_s29, 256  }
 0x815   : > { %4933 = vsyncadd (!%p4707_p13), %s3510_s29, 4294967040  ;;  %s5827_s16 = sld [smem:[#allocation16_spill]]  ;;  %s5828_s17 = sld [smem:[#allocation15_spill]] }
 0x816   : > { %s5829_s15 = sld [smem:[#allocation17_spill]]  ;;  %s5830_s13 = smov %s4940_s14 }
 0x81b   : > { %p23_p1 = scmp.ge.s32.totalorder %s5827_s16, 4   ;;  %s5831_s14 = smov %s5828_s17 }
 0x81d   :  { %25 = sbr.rel (!%p23_p1) target bundleno = 8 (0x8), region = 120 }
 0x824   :  { %3515 = vsyncpa [#allocation3], 1 }
 0x825   :  { %3517 = vsyncpa [#allocation3 + $0x1], 1 }
 0x826   :  { %3518 = vsyncpa [#allocation6], 1 }
 0x827   :  { %3519 = vsyncpa [#allocation9], 1 }
 0x828   :  { %3520 = vsyncpa [#allocation4], 1 }
 0x829   :  { %3522 = vsyncpa [#allocation4 + $0x1], 1 }

</bundles_post_ra>
